<compile_context>
chip_gen: v5e
topology: v5e:2x2
jax: 0.10.0
libtpu: 0.0.40
codegen_flags: <defaults>
</compile_context>

<pallas_src>
import functools

import jax
import jax.numpy as jnp
from jax.experimental import pallas as pl
from jax.experimental.pallas import tpu as pltpu


def _conv_bias_add_act_kernel(x_ref, w_ref, b_ref, *rest,
                              cin, kh, kw, act_fn, has_y):
    # x_ref:     (N, Cin, H, W)          VMEM
    # w_ref:     (Cout*Cin*KH*KW,)       SMEM (flattened OIHW conv weights)
    # b_ref:     (Cout,)                 SMEM
    # [y_ref:    (N, Cout, OH, OW)       VMEM   -- only when has_y]
    # [alpha:    (1,)                    SMEM   -- only when has_y]
    # o_ref:     (N, Cout, OH, OW)       VMEM
    if has_y:
        y_ref, alpha_ref, o_ref = rest
        alpha = alpha_ref[0]
    else:
        (o_ref,) = rest

    n_batch, cout, oh, ow = o_ref.shape

    for n in range(n_batch):
        # Hoisted lane-shifted views: shifted[ci][iw] has shape (H, OW).
        # Only iw=1,2 are real lane shifts; iw=0 is a plain truncation.
        shifted = []
        for ci in range(cin):
            xp = x_ref[n, ci]                         # (H, W)
            shifted.append([xp[:, iw:iw + ow] for iw in range(kw)])

        # Independent partial accumulators: one per (output channel, kernel row).
        partials = [[None] * kh for _ in range(cout)]
        for ci in range(cin):
            for ih in range(kh):
                for iw in range(kw):
                    # Sublane-only slice, computed once and reused by all co.
                    tap = shifted[ci][iw][ih:ih + oh, :]        # (OH, OW)
                    for co in range(cout):
                        w_s = w_ref[((co * cin + ci) * kh + ih) * kw + iw]
                        term = tap * w_s
                        p = partials[co][ih]
                        partials[co][ih] = term if p is None else p + term

        for co in range(cout):
            acc = partials[co][0]
            for ih in range(1, kh):
                acc = acc + partials[co][ih]
            acc = acc + b_ref[co]                      # bias (scalar broadcast)
            if has_y:
                acc = acc + alpha * y_ref[n, co]       # x.add(y, alpha=alpha)
            o_ref[n, co] = act_fn(acc).astype(o_ref.dtype)


def conv_bias_add_activation(x, weight, bias=None, y=None, alpha=1.0, act_fn=None):
    """Forward pass of ConvBiasAddActivation.

    x:      (N, Cin, H, W)       NCHW, like torch
    weight: (Cout, Cin, KH, KW)  torch OIHW
    bias:   (Cout,) or None
    y:      optional (N, Cout, OH, OW) residual
    Returns (N, Cout, OH, OW), float32.
    """
    if act_fn is None:
        act_fn = lambda v: v   # torch.nn.Identity

    n, cin, h, w = x.shape
    cout, cin_w, kh, kw = weight.shape
    assert cin == cin_w
    oh, ow = h - kh + 1, w - kw + 1  # stride=1, padding=0 ('VALID')

    x = x.astype(jnp.float32)
    w_flat = weight.astype(jnp.float32).reshape(-1)
    if bias is None:
        b_flat = jnp.zeros((cout,), jnp.float32)
    else:
        b_flat = bias.astype(jnp.float32).reshape(-1)

    has_y = y is not None
    kernel = functools.partial(_conv_bias_add_act_kernel,
                               cin=cin, kh=kh, kw=kw, act_fn=act_fn, has_y=has_y)

    in_specs = [
        pl.BlockSpec(memory_space=pltpu.MemorySpace.VMEM),   # x
        pl.BlockSpec(memory_space=pltpu.MemorySpace.SMEM),   # weights (scalars)
        pl.BlockSpec(memory_space=pltpu.MemorySpace.SMEM),   # bias (scalars)
    ]
    args = [x, w_flat, b_flat]
    if has_y:
        in_specs += [
            pl.BlockSpec(memory_space=pltpu.MemorySpace.VMEM),   # y
            pl.BlockSpec(memory_space=pltpu.MemorySpace.SMEM),   # alpha (scalar)
        ]
        args += [y.astype(jnp.float32), jnp.full((1,), alpha, jnp.float32)]

    # TODO(synk): for large N / H / W, add grid=(N,) with dimension_semantics=
    # ("parallel",) (v7x dual-TC) and H-tiled BlockSpecs with a (KH-1)-row halo
    # sized for v7x's 64 MiB VMEM; at this toy size a gridless call is fastest.
    return pl.pallas_call(
        kernel,
        out_shape=jax.ShapeDtypeStruct((n, cout, oh, ow), jnp.float32),
        in_specs=in_specs,
        out_specs=pl.BlockSpec(memory_space=pltpu.MemorySpace.VMEM),
    )(*args)


def _reference(x, weight, bias, y=None, alpha=1.0, act_fn=None):
    if act_fn is None:
        act_fn = lambda v: v
    out = jax.lax.conv_general_dilated(
        x.astype(jnp.float32), weight.astype(jnp.float32),
        window_strides=(1, 1), padding='VALID',
        dimension_numbers=('NCHW', 'OIHW', 'NCHW'))
    if bias is not None:
        out = out + bias.astype(jnp.float32).reshape(1, -1, 1, 1)
    if y is not None:
        out = out + alpha * y.astype(jnp.float32)
    return act_fn(out)


if __name__ == "__main__":
    key = jax.random.PRNGKey(0)
    k_x, k_w, k_b, k_y = jax.random.split(key, 4)

    # Conv2d(2, 2, 3, bias=True): deterministic synthetic parameters.
    N, CIN, H, W = 2, 2, 16, 16
    COUT, KH, KW = 2, 3, 3
    x = jax.random.normal(k_x, (N, CIN, H, W), jnp.float32)
    weight = jax.random.normal(k_w, (COUT, CIN, KH, KW), jnp.float32) * 0.2
    bias = jax.random.normal(k_b, (COUT,), jnp.float32) * 0.1
    y = jax.random.normal(k_y, (N, COUT, H - KH + 1, W - KW + 1), jnp.float32)
    alpha = 0.5

    # With residual add (y, alpha), default activation = Identity.
    out = jax.block_until_ready(conv_bias_add_activation(x, weight, bias, y=y, alpha=alpha))
    ref = _reference(x, weight, bias, y=y, alpha=alpha)
    assert jnp.allclose(out, ref, atol=1e-4, rtol=1e-4), "mismatch (with y)"

    # y=None path (specialized kernel: plain conv + bias + Identity).
    out2 = jax.block_until_ready(conv_bias_add_activation(x, weight, bias, y=None))
    ref2 = _reference(x, weight, bias, y=None)
    assert jnp.allclose(out2, ref2, atol=1e-4, rtol=1e-4), "mismatch (y=None)"

    # Non-default activation_cls (ReLU), with residual.
    out3 = jax.block_until_ready(
        conv_bias_add_activation(x, weight, bias, y=y, alpha=alpha, act_fn=jax.nn.relu))
    ref3 = _reference(x, weight, bias, y=y, alpha=alpha, act_fn=jax.nn.relu)
    assert jnp.allclose(out3, ref3, atol=1e-4, rtol=1e-4), "mismatch (relu)"

    print("KERNEL_OK")
</pallas_src>

<mosaic_0001>
module attributes {stable_mosaic.version = 11 : i64} {
  func.func @_conv_bias_add_act_kernel(%arg0: memref<2x2x16x16xf32, #tpu.memory_space<vmem>>, %arg1: memref<36xf32, #tpu.memory_space<smem>>, %arg2: memref<2xf32, #tpu.memory_space<smem>>, %arg3: memref<2x2x14x14xf32, #tpu.memory_space<vmem>>, %arg4: memref<1xf32, #tpu.memory_space<smem>>, %arg5: memref<2x2x14x14xf32, #tpu.memory_space<vmem>>) attributes {dimension_semantics = [], scalar_prefetch = 0 : i64, scratch_operands = 0 : i64, tpu.core_type = #tpu.core_type<tc>} {
    %c0 = arith.constant 0 : index
    %0 = memref.load %arg4[%c0] : memref<1xf32, #tpu.memory_space<smem>>
    %c0_0 = arith.constant 0 : index
    %c0_1 = arith.constant 0 : index
    %c0_2 = arith.constant 0 : index
    %c0_3 = arith.constant 0 : index
    %1 = vector.load %arg0[%c0_0, %c0_1, %c0_2, %c0_3] : memref<2x2x16x16xf32, #tpu.memory_space<vmem>>, vector<1x1x16x16xf32>
    %2 = vector.shape_cast %1 : vector<1x1x16x16xf32> to vector<16x16xf32>
    %3 = vector.extract_strided_slice %2 {offsets = [0, 0], sizes = [16, 14], strides = [1, 1]} : vector<16x16xf32> to vector<16x14xf32>
    %4 = vector.extract_strided_slice %2 {offsets = [0, 1], sizes = [16, 14], strides = [1, 1]} : vector<16x16xf32> to vector<16x14xf32>
    %5 = vector.extract_strided_slice %2 {offsets = [0, 2], sizes = [16, 14], strides = [1, 1]} : vector<16x16xf32> to vector<16x14xf32>
    %c0_4 = arith.constant 0 : index
    %c1 = arith.constant 1 : index
    %c0_5 = arith.constant 0 : index
    %c0_6 = arith.constant 0 : index
    %6 = vector.load %arg0[%c0_4, %c1, %c0_5, %c0_6] : memref<2x2x16x16xf32, #tpu.memory_space<vmem>>, vector<1x1x16x16xf32>
    %7 = vector.shape_cast %6 : vector<1x1x16x16xf32> to vector<16x16xf32>
    %8 = vector.extract_strided_slice %7 {offsets = [0, 0], sizes = [16, 14], strides = [1, 1]} : vector<16x16xf32> to vector<16x14xf32>
    %9 = vector.extract_strided_slice %7 {offsets = [0, 1], sizes = [16, 14], strides = [1, 1]} : vector<16x16xf32> to vector<16x14xf32>
    %10 = vector.extract_strided_slice %7 {offsets = [0, 2], sizes = [16, 14], strides = [1, 1]} : vector<16x16xf32> to vector<16x14xf32>
    %11 = vector.extract_strided_slice %3 {offsets = [0, 0], sizes = [14, 14], strides = [1, 1]} : vector<16x14xf32> to vector<14x14xf32>
    %c0_7 = arith.constant 0 : index
    %12 = memref.load %arg1[%c0_7] : memref<36xf32, #tpu.memory_space<smem>>
    %13 = vector.broadcast %12 : f32 to vector<14x14xf32>
    %14 = arith.mulf %11, %13 : vector<14x14xf32>
    %c18 = arith.constant 18 : index
    %15 = memref.load %arg1[%c18] : memref<36xf32, #tpu.memory_space<smem>>
    %16 = vector.broadcast %15 : f32 to vector<14x14xf32>
    %17 = arith.mulf %11, %16 : vector<14x14xf32>
    %18 = vector.extract_strided_slice %4 {offsets = [0, 0], sizes = [14, 14], strides = [1, 1]} : vector<16x14xf32> to vector<14x14xf32>
    %c1_8 = arith.constant 1 : index
    %19 = memref.load %arg1[%c1_8] : memref<36xf32, #tpu.memory_space<smem>>
    %20 = vector.broadcast %19 : f32 to vector<14x14xf32>
    %21 = arith.mulf %18, %20 : vector<14x14xf32>
    %22 = arith.addf %14, %21 : vector<14x14xf32>
    %c19 = arith.constant 19 : index
    %23 = memref.load %arg1[%c19] : memref<36xf32, #tpu.memory_space<smem>>
    %24 = vector.broadcast %23 : f32 to vector<14x14xf32>
    %25 = arith.mulf %18, %24 : vector<14x14xf32>
    %26 = arith.addf %17, %25 : vector<14x14xf32>
    %27 = vector.extract_strided_slice %5 {offsets = [0, 0], sizes = [14, 14], strides = [1, 1]} : vector<16x14xf32> to vector<14x14xf32>
    %c2 = arith.constant 2 : index
    %28 = memref.load %arg1[%c2] : memref<36xf32, #tpu.memory_space<smem>>
    %29 = vector.broadcast %28 : f32 to vector<14x14xf32>
    %30 = arith.mulf %27, %29 : vector<14x14xf32>
    %31 = arith.addf %22, %30 : vector<14x14xf32>
    %c20 = arith.constant 20 : index
    %32 = memref.load %arg1[%c20] : memref<36xf32, #tpu.memory_space<smem>>
    %33 = vector.broadcast %32 : f32 to vector<14x14xf32>
    %34 = arith.mulf %27, %33 : vector<14x14xf32>
    %35 = arith.addf %26, %34 : vector<14x14xf32>
    %36 = vector.extract_strided_slice %3 {offsets = [1, 0], sizes = [14, 14], strides = [1, 1]} : vector<16x14xf32> to vector<14x14xf32>
    %c3 = arith.constant 3 : index
    %37 = memref.load %arg1[%c3] : memref<36xf32, #tpu.memory_space<smem>>
    %38 = vector.broadcast %37 : f32 to vector<14x14xf32>
    %39 = arith.mulf %36, %38 : vector<14x14xf32>
    %c21 = arith.constant 21 : index
    %40 = memref.load %arg1[%c21] : memref<36xf32, #tpu.memory_space<smem>>
    %41 = vector.broadcast %40 : f32 to vector<14x14xf32>
    %42 = arith.mulf %36, %41 : vector<14x14xf32>
    %43 = vector.extract_strided_slice %4 {offsets = [1, 0], sizes = [14, 14], strides = [1, 1]} : vector<16x14xf32> to vector<14x14xf32>
    %c4 = arith.constant 4 : index
    %44 = memref.load %arg1[%c4] : memref<36xf32, #tpu.memory_space<smem>>
    %45 = vector.broadcast %44 : f32 to vector<14x14xf32>
    %46 = arith.mulf %43, %45 : vector<14x14xf32>
    %47 = arith.addf %39, %46 : vector<14x14xf32>
    %c22 = arith.constant 22 : index
    %48 = memref.load %arg1[%c22] : memref<36xf32, #tpu.memory_space<smem>>
    %49 = vector.broadcast %48 : f32 to vector<14x14xf32>
    %50 = arith.mulf %43, %49 : vector<14x14xf32>
    %51 = arith.addf %42, %50 : vector<14x14xf32>
    %52 = vector.extract_strided_slice %5 {offsets = [1, 0], sizes = [14, 14], strides = [1, 1]} : vector<16x14xf32> to vector<14x14xf32>
    %c5 = arith.constant 5 : index
    %53 = memref.load %arg1[%c5] : memref<36xf32, #tpu.memory_space<smem>>
    %54 = vector.broadcast %53 : f32 to vector<14x14xf32>
    %55 = arith.mulf %52, %54 : vector<14x14xf32>
    %56 = arith.addf %47, %55 : vector<14x14xf32>
    %c23 = arith.constant 23 : index
    %57 = memref.load %arg1[%c23] : memref<36xf32, #tpu.memory_space<smem>>
    %58 = vector.broadcast %57 : f32 to vector<14x14xf32>
    %59 = arith.mulf %52, %58 : vector<14x14xf32>
    %60 = arith.addf %51, %59 : vector<14x14xf32>
    %61 = vector.extract_strided_slice %3 {offsets = [2, 0], sizes = [14, 14], strides = [1, 1]} : vector<16x14xf32> to vector<14x14xf32>
    %c6 = arith.constant 6 : index
    %62 = memref.load %arg1[%c6] : memref<36xf32, #tpu.memory_space<smem>>
    %63 = vector.broadcast %62 : f32 to vector<14x14xf32>
    %64 = arith.mulf %61, %63 : vector<14x14xf32>
    %c24 = arith.constant 24 : index
    %65 = memref.load %arg1[%c24] : memref<36xf32, #tpu.memory_space<smem>>
    %66 = vector.broadcast %65 : f32 to vector<14x14xf32>
    %67 = arith.mulf %61, %66 : vector<14x14xf32>
    %68 = vector.extract_strided_slice %4 {offsets = [2, 0], sizes = [14, 14], strides = [1, 1]} : vector<16x14xf32> to vector<14x14xf32>
    %c7 = arith.constant 7 : index
    %69 = memref.load %arg1[%c7] : memref<36xf32, #tpu.memory_space<smem>>
    %70 = vector.broadcast %69 : f32 to vector<14x14xf32>
    %71 = arith.mulf %68, %70 : vector<14x14xf32>
    %72 = arith.addf %64, %71 : vector<14x14xf32>
    %c25 = arith.constant 25 : index
    %73 = memref.load %arg1[%c25] : memref<36xf32, #tpu.memory_space<smem>>
    %74 = vector.broadcast %73 : f32 to vector<14x14xf32>
    %75 = arith.mulf %68, %74 : vector<14x14xf32>
    %76 = arith.addf %67, %75 : vector<14x14xf32>
    %77 = vector.extract_strided_slice %5 {offsets = [2, 0], sizes = [14, 14], strides = [1, 1]} : vector<16x14xf32> to vector<14x14xf32>
    %c8 = arith.constant 8 : index
    %78 = memref.load %arg1[%c8] : memref<36xf32, #tpu.memory_space<smem>>
    %79 = vector.broadcast %78 : f32 to vector<14x14xf32>
    %80 = arith.mulf %77, %79 : vector<14x14xf32>
    %81 = arith.addf %72, %80 : vector<14x14xf32>
    %c26 = arith.constant 26 : index
    %82 = memref.load %arg1[%c26] : memref<36xf32, #tpu.memory_space<smem>>
    %83 = vector.broadcast %82 : f32 to vector<14x14xf32>
    %84 = arith.mulf %77, %83 : vector<14x14xf32>
    %85 = arith.addf %76, %84 : vector<14x14xf32>
    %86 = vector.extract_strided_slice %8 {offsets = [0, 0], sizes = [14, 14], strides = [1, 1]} : vector<16x14xf32> to vector<14x14xf32>
    %c9 = arith.constant 9 : index
    %87 = memref.load %arg1[%c9] : memref<36xf32, #tpu.memory_space<smem>>
    %88 = vector.broadcast %87 : f32 to vector<14x14xf32>
    %89 = arith.mulf %86, %88 : vector<14x14xf32>
    %90 = arith.addf %31, %89 : vector<14x14xf32>
    %c27 = arith.constant 27 : index
    %91 = memref.load %arg1[%c27] : memref<36xf32, #tpu.memory_space<smem>>
    %92 = vector.broadcast %91 : f32 to vector<14x14xf32>
    %93 = arith.mulf %86, %92 : vector<14x14xf32>
    %94 = arith.addf %35, %93 : vector<14x14xf32>
    %95 = vector.extract_strided_slice %9 {offsets = [0, 0], sizes = [14, 14], strides = [1, 1]} : vector<16x14xf32> to vector<14x14xf32>
    %c10 = arith.constant 10 : index
    %96 = memref.load %arg1[%c10] : memref<36xf32, #tpu.memory_space<smem>>
    %97 = vector.broadcast %96 : f32 to vector<14x14xf32>
    %98 = arith.mulf %95, %97 : vector<14x14xf32>
    %99 = arith.addf %90, %98 : vector<14x14xf32>
    %c28 = arith.constant 28 : index
    %100 = memref.load %arg1[%c28] : memref<36xf32, #tpu.memory_space<smem>>
    %101 = vector.broadcast %100 : f32 to vector<14x14xf32>
    %102 = arith.mulf %95, %101 : vector<14x14xf32>
    %103 = arith.addf %94, %102 : vector<14x14xf32>
    %104 = vector.extract_strided_slice %10 {offsets = [0, 0], sizes = [14, 14], strides = [1, 1]} : vector<16x14xf32> to vector<14x14xf32>
    %c11 = arith.constant 11 : index
    %105 = memref.load %arg1[%c11] : memref<36xf32, #tpu.memory_space<smem>>
    %106 = vector.broadcast %105 : f32 to vector<14x14xf32>
    %107 = arith.mulf %104, %106 : vector<14x14xf32>
    %108 = arith.addf %99, %107 : vector<14x14xf32>
    %c29 = arith.constant 29 : index
    %109 = memref.load %arg1[%c29] : memref<36xf32, #tpu.memory_space<smem>>
    %110 = vector.broadcast %109 : f32 to vector<14x14xf32>
    %111 = arith.mulf %104, %110 : vector<14x14xf32>
    %112 = arith.addf %103, %111 : vector<14x14xf32>
    %113 = vector.extract_strided_slice %8 {offsets = [1, 0], sizes = [14, 14], strides = [1, 1]} : vector<16x14xf32> to vector<14x14xf32>
    %c12 = arith.constant 12 : index
    %114 = memref.load %arg1[%c12] : memref<36xf32, #tpu.memory_space<smem>>
    %115 = vector.broadcast %114 : f32 to vector<14x14xf32>
    %116 = arith.mulf %113, %115 : vector<14x14xf32>
    %117 = arith.addf %56, %116 : vector<14x14xf32>
    %c30 = arith.constant 30 : index
    %118 = memref.load %arg1[%c30] : memref<36xf32, #tpu.memory_space<smem>>
    %119 = vector.broadcast %118 : f32 to vector<14x14xf32>
    %120 = arith.mulf %113, %119 : vector<14x14xf32>
    %121 = arith.addf %60, %120 : vector<14x14xf32>
    %122 = vector.extract_strided_slice %9 {offsets = [1, 0], sizes = [14, 14], strides = [1, 1]} : vector<16x14xf32> to vector<14x14xf32>
    %c13 = arith.constant 13 : index
    %123 = memref.load %arg1[%c13] : memref<36xf32, #tpu.memory_space<smem>>
    %124 = vector.broadcast %123 : f32 to vector<14x14xf32>
    %125 = arith.mulf %122, %124 : vector<14x14xf32>
    %126 = arith.addf %117, %125 : vector<14x14xf32>
    %c31 = arith.constant 31 : index
    %127 = memref.load %arg1[%c31] : memref<36xf32, #tpu.memory_space<smem>>
    %128 = vector.broadcast %127 : f32 to vector<14x14xf32>
    %129 = arith.mulf %122, %128 : vector<14x14xf32>
    %130 = arith.addf %121, %129 : vector<14x14xf32>
    %131 = vector.extract_strided_slice %10 {offsets = [1, 0], sizes = [14, 14], strides = [1, 1]} : vector<16x14xf32> to vector<14x14xf32>
    %c14 = arith.constant 14 : index
    %132 = memref.load %arg1[%c14] : memref<36xf32, #tpu.memory_space<smem>>
    %133 = vector.broadcast %132 : f32 to vector<14x14xf32>
    %134 = arith.mulf %131, %133 : vector<14x14xf32>
    %135 = arith.addf %126, %134 : vector<14x14xf32>
    %c32 = arith.constant 32 : index
    %136 = memref.load %arg1[%c32] : memref<36xf32, #tpu.memory_space<smem>>
    %137 = vector.broadcast %136 : f32 to vector<14x14xf32>
    %138 = arith.mulf %131, %137 : vector<14x14xf32>
    %139 = arith.addf %130, %138 : vector<14x14xf32>
    %140 = vector.extract_strided_slice %8 {offsets = [2, 0], sizes = [14, 14], strides = [1, 1]} : vector<16x14xf32> to vector<14x14xf32>
    %c15 = arith.constant 15 : index
    %141 = memref.load %arg1[%c15] : memref<36xf32, #tpu.memory_space<smem>>
    %142 = vector.broadcast %141 : f32 to vector<14x14xf32>
    %143 = arith.mulf %140, %142 : vector<14x14xf32>
    %144 = arith.addf %81, %143 : vector<14x14xf32>
    %c33 = arith.constant 33 : index
    %145 = memref.load %arg1[%c33] : memref<36xf32, #tpu.memory_space<smem>>
    %146 = vector.broadcast %145 : f32 to vector<14x14xf32>
    %147 = arith.mulf %140, %146 : vector<14x14xf32>
    %148 = arith.addf %85, %147 : vector<14x14xf32>
    %149 = vector.extract_strided_slice %9 {offsets = [2, 0], sizes = [14, 14], strides = [1, 1]} : vector<16x14xf32> to vector<14x14xf32>
    %c16 = arith.constant 16 : index
    %150 = memref.load %arg1[%c16] : memref<36xf32, #tpu.memory_space<smem>>
    %151 = vector.broadcast %150 : f32 to vector<14x14xf32>
    %152 = arith.mulf %149, %151 : vector<14x14xf32>
    %153 = arith.addf %144, %152 : vector<14x14xf32>
    %c34 = arith.constant 34 : index
    %154 = memref.load %arg1[%c34] : memref<36xf32, #tpu.memory_space<smem>>
    %155 = vector.broadcast %154 : f32 to vector<14x14xf32>
    %156 = arith.mulf %149, %155 : vector<14x14xf32>
    %157 = arith.addf %148, %156 : vector<14x14xf32>
    %158 = vector.extract_strided_slice %10 {offsets = [2, 0], sizes = [14, 14], strides = [1, 1]} : vector<16x14xf32> to vector<14x14xf32>
    %c17 = arith.constant 17 : index
    %159 = memref.load %arg1[%c17] : memref<36xf32, #tpu.memory_space<smem>>
    %160 = vector.broadcast %159 : f32 to vector<14x14xf32>
    %161 = arith.mulf %158, %160 : vector<14x14xf32>
    %162 = arith.addf %153, %161 : vector<14x14xf32>
    %c35 = arith.constant 35 : index
    %163 = memref.load %arg1[%c35] : memref<36xf32, #tpu.memory_space<smem>>
    %164 = vector.broadcast %163 : f32 to vector<14x14xf32>
    %165 = arith.mulf %158, %164 : vector<14x14xf32>
    %166 = arith.addf %157, %165 : vector<14x14xf32>
    %167 = arith.addf %108, %135 : vector<14x14xf32>
    %168 = arith.addf %167, %162 : vector<14x14xf32>
    %c0_9 = arith.constant 0 : index
    %169 = memref.load %arg2[%c0_9] : memref<2xf32, #tpu.memory_space<smem>>
    %170 = vector.broadcast %169 : f32 to vector<14x14xf32>
    %171 = arith.addf %168, %170 : vector<14x14xf32>
    %c0_10 = arith.constant 0 : index
    %c0_11 = arith.constant 0 : index
    %c0_12 = arith.constant 0 : index
    %c0_13 = arith.constant 0 : index
    %172 = vector.load %arg3[%c0_10, %c0_11, %c0_12, %c0_13] : memref<2x2x14x14xf32, #tpu.memory_space<vmem>>, vector<1x1x14x14xf32>
    %173 = vector.shape_cast %172 : vector<1x1x14x14xf32> to vector<14x14xf32>
    %174 = vector.broadcast %0 : f32 to vector<14x14xf32>
    %175 = arith.mulf %174, %173 : vector<14x14xf32>
    %176 = arith.addf %171, %175 : vector<14x14xf32>
    %c0_14 = arith.constant 0 : index
    %c0_15 = arith.constant 0 : index
    %c0_16 = arith.constant 0 : index
    %c0_17 = arith.constant 0 : index
    %177 = vector.load %arg5[%c0_14, %c0_15, %c0_16, %c0_17] : memref<2x2x14x14xf32, #tpu.memory_space<vmem>>, vector<1x1x14x14xf32>
    %178 = vector.shape_cast %177 : vector<1x1x14x14xf32> to vector<14x14xf32>
    %179 = vector.shape_cast %176 : vector<14x14xf32> to vector<1x1x14x14xf32>
    tpu.vector_store %arg5[%c0_14, %c0_15, %c0_16, %c0_17], %179 {strides = array<i32>} : memref<2x2x14x14xf32, #tpu.memory_space<vmem>>, vector<1x1x14x14xf32>,
    %180 = arith.addf %112, %139 : vector<14x14xf32>
    %181 = arith.addf %180, %166 : vector<14x14xf32>
    %c1_18 = arith.constant 1 : index
    %182 = memref.load %arg2[%c1_18] : memref<2xf32, #tpu.memory_space<smem>>
    %183 = vector.broadcast %182 : f32 to vector<14x14xf32>
    %184 = arith.addf %181, %183 : vector<14x14xf32>
    %c0_19 = arith.constant 0 : index
    %c1_20 = arith.constant 1 : index
    %c0_21 = arith.constant 0 : index
    %c0_22 = arith.constant 0 : index
    %185 = vector.load %arg3[%c0_19, %c1_20, %c0_21, %c0_22] : memref<2x2x14x14xf32, #tpu.memory_space<vmem>>, vector<1x1x14x14xf32>
    %186 = vector.shape_cast %185 : vector<1x1x14x14xf32> to vector<14x14xf32>
    %187 = vector.broadcast %0 : f32 to vector<14x14xf32>
    %188 = arith.mulf %187, %186 : vector<14x14xf32>
    %189 = arith.addf %184, %188 : vector<14x14xf32>
    %c0_23 = arith.constant 0 : index
    %c1_24 = arith.constant 1 : index
    %c0_25 = arith.constant 0 : index
    %c0_26 = arith.constant 0 : index
    %190 = vector.load %arg5[%c0_23, %c1_24, %c0_25, %c0_26] : memref<2x2x14x14xf32, #tpu.memory_space<vmem>>, vector<1x1x14x14xf32>
    %191 = vector.shape_cast %190 : vector<1x1x14x14xf32> to vector<14x14xf32>
    %192 = vector.shape_cast %189 : vector<14x14xf32> to vector<1x1x14x14xf32>
    tpu.vector_store %arg5[%c0_23, %c1_24, %c0_25, %c0_26], %192 {strides = array<i32>} : memref<2x2x14x14xf32, #tpu.memory_space<vmem>>, vector<1x1x14x14xf32>,
    %c1_27 = arith.constant 1 : index
    %c0_28 = arith.constant 0 : index
    %c0_29 = arith.constant 0 : index
    %c0_30 = arith.constant 0 : index
    %193 = vector.load %arg0[%c1_27, %c0_28, %c0_29, %c0_30] : memref<2x2x16x16xf32, #tpu.memory_space<vmem>>, vector<1x1x16x16xf32>
    %194 = vector.shape_cast %193 : vector<1x1x16x16xf32> to vector<16x16xf32>
    %195 = vector.extract_strided_slice %194 {offsets = [0, 0], sizes = [16, 14], strides = [1, 1]} : vector<16x16xf32> to vector<16x14xf32>
    %196 = vector.extract_strided_slice %194 {offsets = [0, 1], sizes = [16, 14], strides = [1, 1]} : vector<16x16xf32> to vector<16x14xf32>
    %197 = vector.extract_strided_slice %194 {offsets = [0, 2], sizes = [16, 14], strides = [1, 1]} : vector<16x16xf32> to vector<16x14xf32>
    %c1_31 = arith.constant 1 : index
    %c1_32 = arith.constant 1 : index
    %c0_33 = arith.constant 0 : index
    %c0_34 = arith.constant 0 : index
    %198 = vector.load %arg0[%c1_31, %c1_32, %c0_33, %c0_34] : memref<2x2x16x16xf32, #tpu.memory_space<vmem>>, vector<1x1x16x16xf32>
    %199 = vector.shape_cast %198 : vector<1x1x16x16xf32> to vector<16x16xf32>
    %200 = vector.extract_strided_slice %199 {offsets = [0, 0], sizes = [16, 14], strides = [1, 1]} : vector<16x16xf32> to vector<16x14xf32>
    %201 = vector.extract_strided_slice %199 {offsets = [0, 1], sizes = [16, 14], strides = [1, 1]} : vector<16x16xf32> to vector<16x14xf32>
    %202 = vector.extract_strided_slice %199 {offsets = [0, 2], sizes = [16, 14], strides = [1, 1]} : vector<16x16xf32> to vector<16x14xf32>
    %203 = vector.extract_strided_slice %195 {offsets = [0, 0], sizes = [14, 14], strides = [1, 1]} : vector<16x14xf32> to vector<14x14xf32>
    %c0_35 = arith.constant 0 : index
    %204 = memref.load %arg1[%c0_35] : memref<36xf32, #tpu.memory_space<smem>>
    %205 = vector.broadcast %204 : f32 to vector<14x14xf32>
    %206 = arith.mulf %203, %205 : vector<14x14xf32>
    %c18_36 = arith.constant 18 : index
    %207 = memref.load %arg1[%c18_36] : memref<36xf32, #tpu.memory_space<smem>>
    %208 = vector.broadcast %207 : f32 to vector<14x14xf32>
    %209 = arith.mulf %203, %208 : vector<14x14xf32>
    %210 = vector.extract_strided_slice %196 {offsets = [0, 0], sizes = [14, 14], strides = [1, 1]} : vector<16x14xf32> to vector<14x14xf32>
    %c1_37 = arith.constant 1 : index
    %211 = memref.load %arg1[%c1_37] : memref<36xf32, #tpu.memory_space<smem>>
    %212 = vector.broadcast %211 : f32 to vector<14x14xf32>
    %213 = arith.mulf %210, %212 : vector<14x14xf32>
    %214 = arith.addf %206, %213 : vector<14x14xf32>
    %c19_38 = arith.constant 19 : index
    %215 = memref.load %arg1[%c19_38] : memref<36xf32, #tpu.memory_space<smem>>
    %216 = vector.broadcast %215 : f32 to vector<14x14xf32>
    %217 = arith.mulf %210, %216 : vector<14x14xf32>
    %218 = arith.addf %209, %217 : vector<14x14xf32>
    %219 = vector.extract_strided_slice %197 {offsets = [0, 0], sizes = [14, 14], strides = [1, 1]} : vector<16x14xf32> to vector<14x14xf32>
    %c2_39 = arith.constant 2 : index
    %220 = memref.load %arg1[%c2_39] : memref<36xf32, #tpu.memory_space<smem>>
    %221 = vector.broadcast %220 : f32 to vector<14x14xf32>
    %222 = arith.mulf %219, %221 : vector<14x14xf32>
    %223 = arith.addf %214, %222 : vector<14x14xf32>
    %c20_40 = arith.constant 20 : index
    %224 = memref.load %arg1[%c20_40] : memref<36xf32, #tpu.memory_space<smem>>
    %225 = vector.broadcast %224 : f32 to vector<14x14xf32>
    %226 = arith.mulf %219, %225 : vector<14x14xf32>
    %227 = arith.addf %218, %226 : vector<14x14xf32>
    %228 = vector.extract_strided_slice %195 {offsets = [1, 0], sizes = [14, 14], strides = [1, 1]} : vector<16x14xf32> to vector<14x14xf32>
    %c3_41 = arith.constant 3 : index
    %229 = memref.load %arg1[%c3_41] : memref<36xf32, #tpu.memory_space<smem>>
    %230 = vector.broadcast %229 : f32 to vector<14x14xf32>
    %231 = arith.mulf %228, %230 : vector<14x14xf32>
    %c21_42 = arith.constant 21 : index
    %232 = memref.load %arg1[%c21_42] : memref<36xf32, #tpu.memory_space<smem>>
    %233 = vector.broadcast %232 : f32 to vector<14x14xf32>
    %234 = arith.mulf %228, %233 : vector<14x14xf32>
    %235 = vector.extract_strided_slice %196 {offsets = [1, 0], sizes = [14, 14], strides = [1, 1]} : vector<16x14xf32> to vector<14x14xf32>
    %c4_43 = arith.constant 4 : index
    %236 = memref.load %arg1[%c4_43] : memref<36xf32, #tpu.memory_space<smem>>
    %237 = vector.broadcast %236 : f32 to vector<14x14xf32>
    %238 = arith.mulf %235, %237 : vector<14x14xf32>
    %239 = arith.addf %231, %238 : vector<14x14xf32>
    %c22_44 = arith.constant 22 : index
    %240 = memref.load %arg1[%c22_44] : memref<36xf32, #tpu.memory_space<smem>>
    %241 = vector.broadcast %240 : f32 to vector<14x14xf32>
    %242 = arith.mulf %235, %241 : vector<14x14xf32>
    %243 = arith.addf %234, %242 : vector<14x14xf32>
    %244 = vector.extract_strided_slice %197 {offsets = [1, 0], sizes = [14, 14], strides = [1, 1]} : vector<16x14xf32> to vector<14x14xf32>
    %c5_45 = arith.constant 5 : index
    %245 = memref.load %arg1[%c5_45] : memref<36xf32, #tpu.memory_space<smem>>
    %246 = vector.broadcast %245 : f32 to vector<14x14xf32>
    %247 = arith.mulf %244, %246 : vector<14x14xf32>
    %248 = arith.addf %239, %247 : vector<14x14xf32>
    %c23_46 = arith.constant 23 : index
    %249 = memref.load %arg1[%c23_46] : memref<36xf32, #tpu.memory_space<smem>>
    %250 = vector.broadcast %249 : f32 to vector<14x14xf32>
    %251 = arith.mulf %244, %250 : vector<14x14xf32>
    %252 = arith.addf %243, %251 : vector<14x14xf32>
    %253 = vector.extract_strided_slice %195 {offsets = [2, 0], sizes = [14, 14], strides = [1, 1]} : vector<16x14xf32> to vector<14x14xf32>
    %c6_47 = arith.constant 6 : index
    %254 = memref.load %arg1[%c6_47] : memref<36xf32, #tpu.memory_space<smem>>
    %255 = vector.broadcast %254 : f32 to vector<14x14xf32>
    %256 = arith.mulf %253, %255 : vector<14x14xf32>
    %c24_48 = arith.constant 24 : index
    %257 = memref.load %arg1[%c24_48] : memref<36xf32, #tpu.memory_space<smem>>
    %258 = vector.broadcast %257 : f32 to vector<14x14xf32>
    %259 = arith.mulf %253, %258 : vector<14x14xf32>
    %260 = vector.extract_strided_slice %196 {offsets = [2, 0], sizes = [14, 14], strides = [1, 1]} : vector<16x14xf32> to vector<14x14xf32>
    %c7_49 = arith.constant 7 : index
    %261 = memref.load %arg1[%c7_49] : memref<36xf32, #tpu.memory_space<smem>>
    %262 = vector.broadcast %261 : f32 to vector<14x14xf32>
    %263 = arith.mulf %260, %262 : vector<14x14xf32>
    %264 = arith.addf %256, %263 : vector<14x14xf32>
    %c25_50 = arith.constant 25 : index
    %265 = memref.load %arg1[%c25_50] : memref<36xf32, #tpu.memory_space<smem>>
    %266 = vector.broadcast %265 : f32 to vector<14x14xf32>
    %267 = arith.mulf %260, %266 : vector<14x14xf32>
    %268 = arith.addf %259, %267 : vector<14x14xf32>
    %269 = vector.extract_strided_slice %197 {offsets = [2, 0], sizes = [14, 14], strides = [1, 1]} : vector<16x14xf32> to vector<14x14xf32>
    %c8_51 = arith.constant 8 : index
    %270 = memref.load %arg1[%c8_51] : memref<36xf32, #tpu.memory_space<smem>>
    %271 = vector.broadcast %270 : f32 to vector<14x14xf32>
    %272 = arith.mulf %269, %271 : vector<14x14xf32>
    %273 = arith.addf %264, %272 : vector<14x14xf32>
    %c26_52 = arith.constant 26 : index
    %274 = memref.load %arg1[%c26_52] : memref<36xf32, #tpu.memory_space<smem>>
    %275 = vector.broadcast %274 : f32 to vector<14x14xf32>
    %276 = arith.mulf %269, %275 : vector<14x14xf32>
    %277 = arith.addf %268, %276 : vector<14x14xf32>
    %278 = vector.extract_strided_slice %200 {offsets = [0, 0], sizes = [14, 14], strides = [1, 1]} : vector<16x14xf32> to vector<14x14xf32>
    %c9_53 = arith.constant 9 : index
    %279 = memref.load %arg1[%c9_53] : memref<36xf32, #tpu.memory_space<smem>>
    %280 = vector.broadcast %279 : f32 to vector<14x14xf32>
    %281 = arith.mulf %278, %280 : vector<14x14xf32>
    %282 = arith.addf %223, %281 : vector<14x14xf32>
    %c27_54 = arith.constant 27 : index
    %283 = memref.load %arg1[%c27_54] : memref<36xf32, #tpu.memory_space<smem>>
    %284 = vector.broadcast %283 : f32 to vector<14x14xf32>
    %285 = arith.mulf %278, %284 : vector<14x14xf32>
    %286 = arith.addf %227, %285 : vector<14x14xf32>
    %287 = vector.extract_strided_slice %201 {offsets = [0, 0], sizes = [14, 14], strides = [1, 1]} : vector<16x14xf32> to vector<14x14xf32>
    %c10_55 = arith.constant 10 : index
    %288 = memref.load %arg1[%c10_55] : memref<36xf32, #tpu.memory_space<smem>>
    %289 = vector.broadcast %288 : f32 to vector<14x14xf32>
    %290 = arith.mulf %287, %289 : vector<14x14xf32>
    %291 = arith.addf %282, %290 : vector<14x14xf32>
    %c28_56 = arith.constant 28 : index
    %292 = memref.load %arg1[%c28_56] : memref<36xf32, #tpu.memory_space<smem>>
    %293 = vector.broadcast %292 : f32 to vector<14x14xf32>
    %294 = arith.mulf %287, %293 : vector<14x14xf32>
    %295 = arith.addf %286, %294 : vector<14x14xf32>
    %296 = vector.extract_strided_slice %202 {offsets = [0, 0], sizes = [14, 14], strides = [1, 1]} : vector<16x14xf32> to vector<14x14xf32>
    %c11_57 = arith.constant 11 : index
    %297 = memref.load %arg1[%c11_57] : memref<36xf32, #tpu.memory_space<smem>>
    %298 = vector.broadcast %297 : f32 to vector<14x14xf32>
    %299 = arith.mulf %296, %298 : vector<14x14xf32>
    %300 = arith.addf %291, %299 : vector<14x14xf32>
    %c29_58 = arith.constant 29 : index
    %301 = memref.load %arg1[%c29_58] : memref<36xf32, #tpu.memory_space<smem>>
    %302 = vector.broadcast %301 : f32 to vector<14x14xf32>
    %303 = arith.mulf %296, %302 : vector<14x14xf32>
    %304 = arith.addf %295, %303 : vector<14x14xf32>
    %305 = vector.extract_strided_slice %200 {offsets = [1, 0], sizes = [14, 14], strides = [1, 1]} : vector<16x14xf32> to vector<14x14xf32>
    %c12_59 = arith.constant 12 : index
    %306 = memref.load %arg1[%c12_59] : memref<36xf32, #tpu.memory_space<smem>>
    %307 = vector.broadcast %306 : f32 to vector<14x14xf32>
    %308 = arith.mulf %305, %307 : vector<14x14xf32>
    %309 = arith.addf %248, %308 : vector<14x14xf32>
    %c30_60 = arith.constant 30 : index
    %310 = memref.load %arg1[%c30_60] : memref<36xf32, #tpu.memory_space<smem>>
    %311 = vector.broadcast %310 : f32 to vector<14x14xf32>
    %312 = arith.mulf %305, %311 : vector<14x14xf32>
    %313 = arith.addf %252, %312 : vector<14x14xf32>
    %314 = vector.extract_strided_slice %201 {offsets = [1, 0], sizes = [14, 14], strides = [1, 1]} : vector<16x14xf32> to vector<14x14xf32>
    %c13_61 = arith.constant 13 : index
    %315 = memref.load %arg1[%c13_61] : memref<36xf32, #tpu.memory_space<smem>>
    %316 = vector.broadcast %315 : f32 to vector<14x14xf32>
    %317 = arith.mulf %314, %316 : vector<14x14xf32>
    %318 = arith.addf %309, %317 : vector<14x14xf32>
    %c31_62 = arith.constant 31 : index
    %319 = memref.load %arg1[%c31_62] : memref<36xf32, #tpu.memory_space<smem>>
    %320 = vector.broadcast %319 : f32 to vector<14x14xf32>
    %321 = arith.mulf %314, %320 : vector<14x14xf32>
    %322 = arith.addf %313, %321 : vector<14x14xf32>
    %323 = vector.extract_strided_slice %202 {offsets = [1, 0], sizes = [14, 14], strides = [1, 1]} : vector<16x14xf32> to vector<14x14xf32>
    %c14_63 = arith.constant 14 : index
    %324 = memref.load %arg1[%c14_63] : memref<36xf32, #tpu.memory_space<smem>>
    %325 = vector.broadcast %324 : f32 to vector<14x14xf32>
    %326 = arith.mulf %323, %325 : vector<14x14xf32>
    %327 = arith.addf %318, %326 : vector<14x14xf32>
    %c32_64 = arith.constant 32 : index
    %328 = memref.load %arg1[%c32_64] : memref<36xf32, #tpu.memory_space<smem>>
    %329 = vector.broadcast %328 : f32 to vector<14x14xf32>
    %330 = arith.mulf %323, %329 : vector<14x14xf32>
    %331 = arith.addf %322, %330 : vector<14x14xf32>
    %332 = vector.extract_strided_slice %200 {offsets = [2, 0], sizes = [14, 14], strides = [1, 1]} : vector<16x14xf32> to vector<14x14xf32>
    %c15_65 = arith.constant 15 : index
    %333 = memref.load %arg1[%c15_65] : memref<36xf32, #tpu.memory_space<smem>>
    %334 = vector.broadcast %333 : f32 to vector<14x14xf32>
    %335 = arith.mulf %332, %334 : vector<14x14xf32>
    %336 = arith.addf %273, %335 : vector<14x14xf32>
    %c33_66 = arith.constant 33 : index
    %337 = memref.load %arg1[%c33_66] : memref<36xf32, #tpu.memory_space<smem>>
    %338 = vector.broadcast %337 : f32 to vector<14x14xf32>
    %339 = arith.mulf %332, %338 : vector<14x14xf32>
    %340 = arith.addf %277, %339 : vector<14x14xf32>
    %341 = vector.extract_strided_slice %201 {offsets = [2, 0], sizes = [14, 14], strides = [1, 1]} : vector<16x14xf32> to vector<14x14xf32>
    %c16_67 = arith.constant 16 : index
    %342 = memref.load %arg1[%c16_67] : memref<36xf32, #tpu.memory_space<smem>>
    %343 = vector.broadcast %342 : f32 to vector<14x14xf32>
    %344 = arith.mulf %341, %343 : vector<14x14xf32>
    %345 = arith.addf %336, %344 : vector<14x14xf32>
    %c34_68 = arith.constant 34 : index
    %346 = memref.load %arg1[%c34_68] : memref<36xf32, #tpu.memory_space<smem>>
    %347 = vector.broadcast %346 : f32 to vector<14x14xf32>
    %348 = arith.mulf %341, %347 : vector<14x14xf32>
    %349 = arith.addf %340, %348 : vector<14x14xf32>
    %350 = vector.extract_strided_slice %202 {offsets = [2, 0], sizes = [14, 14], strides = [1, 1]} : vector<16x14xf32> to vector<14x14xf32>
    %c17_69 = arith.constant 17 : index
    %351 = memref.load %arg1[%c17_69] : memref<36xf32, #tpu.memory_space<smem>>
    %352 = vector.broadcast %351 : f32 to vector<14x14xf32>
    %353 = arith.mulf %350, %352 : vector<14x14xf32>
    %354 = arith.addf %345, %353 : vector<14x14xf32>
    %c35_70 = arith.constant 35 : index
    %355 = memref.load %arg1[%c35_70] : memref<36xf32, #tpu.memory_space<smem>>
    %356 = vector.broadcast %355 : f32 to vector<14x14xf32>
    %357 = arith.mulf %350, %356 : vector<14x14xf32>
    %358 = arith.addf %349, %357 : vector<14x14xf32>
    %359 = arith.addf %300, %327 : vector<14x14xf32>
    %360 = arith.addf %359, %354 : vector<14x14xf32>
    %c0_71 = arith.constant 0 : index
    %361 = memref.load %arg2[%c0_71] : memref<2xf32, #tpu.memory_space<smem>>
    %362 = vector.broadcast %361 : f32 to vector<14x14xf32>
    %363 = arith.addf %360, %362 : vector<14x14xf32>
    %c1_72 = arith.constant 1 : index
    %c0_73 = arith.constant 0 : index
    %c0_74 = arith.constant 0 : index
    %c0_75 = arith.constant 0 : index
    %364 = vector.load %arg3[%c1_72, %c0_73, %c0_74, %c0_75] : memref<2x2x14x14xf32, #tpu.memory_space<vmem>>, vector<1x1x14x14xf32>
    %365 = vector.shape_cast %364 : vector<1x1x14x14xf32> to vector<14x14xf32>
    %366 = vector.broadcast %0 : f32 to vector<14x14xf32>
    %367 = arith.mulf %366, %365 : vector<14x14xf32>
    %368 = arith.addf %363, %367 : vector<14x14xf32>
    %c1_76 = arith.constant 1 : index
    %c0_77 = arith.constant 0 : index
    %c0_78 = arith.constant 0 : index
    %c0_79 = arith.constant 0 : index
    %369 = vector.load %arg5[%c1_76, %c0_77, %c0_78, %c0_79] : memref<2x2x14x14xf32, #tpu.memory_space<vmem>>, vector<1x1x14x14xf32>
    %370 = vector.shape_cast %369 : vector<1x1x14x14xf32> to vector<14x14xf32>
    %371 = vector.shape_cast %368 : vector<14x14xf32> to vector<1x1x14x14xf32>
    tpu.vector_store %arg5[%c1_76, %c0_77, %c0_78, %c0_79], %371 {strides = array<i32>} : memref<2x2x14x14xf32, #tpu.memory_space<vmem>>, vector<1x1x14x14xf32>,
    %372 = arith.addf %304, %331 : vector<14x14xf32>
    %373 = arith.addf %372, %358 : vector<14x14xf32>
    %c1_80 = arith.constant 1 : index
    %374 = memref.load %arg2[%c1_80] : memref<2xf32, #tpu.memory_space<smem>>
    %375 = vector.broadcast %374 : f32 to vector<14x14xf32>
    %376 = arith.addf %373, %375 : vector<14x14xf32>
    %c1_81 = arith.constant 1 : index
    %c1_82 = arith.constant 1 : index
    %c0_83 = arith.constant 0 : index
    %c0_84 = arith.constant 0 : index
    %377 = vector.load %arg3[%c1_81, %c1_82, %c0_83, %c0_84] : memref<2x2x14x14xf32, #tpu.memory_space<vmem>>, vector<1x1x14x14xf32>
    %378 = vector.shape_cast %377 : vector<1x1x14x14xf32> to vector<14x14xf32>
    %379 = vector.broadcast %0 : f32 to vector<14x14xf32>
    %380 = arith.mulf %379, %378 : vector<14x14xf32>
    %381 = arith.addf %376, %380 : vector<14x14xf32>
    %c1_85 = arith.constant 1 : index
    %c1_86 = arith.constant 1 : index
    %c0_87 = arith.constant 0 : index
    %c0_88 = arith.constant 0 : index
    %382 = vector.load %arg5[%c1_85, %c1_86, %c0_87, %c0_88] : memref<2x2x14x14xf32, #tpu.memory_space<vmem>>, vector<1x1x14x14xf32>
    %383 = vector.shape_cast %382 : vector<1x1x14x14xf32> to vector<14x14xf32>
    %384 = vector.shape_cast %381 : vector<14x14xf32> to vector<1x1x14x14xf32>
    tpu.vector_store %arg5[%c1_85, %c1_86, %c0_87, %c0_88], %384 {strides = array<i32>} : memref<2x2x14x14xf32, #tpu.memory_space<vmem>>, vector<1x1x14x14xf32>,
    return
  }
}

</mosaic_0001>

<bundles_post_ra>
// kernel: tpu_custom_call.1
= control target key start
LH: loop header
LB: loop body
LE: loop exit
PB: predicated region body
PF: predicated region fallthrough
CT: control target
= control target key end

     0   :  { %11 = vsyncpa [#allocation4], 0  ;;  %s1887_s0 = inlined_call_operand.vmem [shape: f32[2,2,16,16], index: 0, kind: input, shape index: {}]   ;;  %s1888_s1 = inlined_call_operand.vmem [shape: f32[36], index: 1, kind: input, shape index: {}]   ;;  %s1889_s2 = inlined_call_operand.vmem [shape: f32[2], index: 2, kind: input, shape index: {}]   ;;  %s1890_s3 = inlined_call_operand.vmem [shape: f32[2,2,14,14], index: 3, kind: input, shape index: {}]   ;;  %s1891_s4 = inlined_call_operand.<no memory space> [shape: f32[1], index: 4, kind: input, shape index: {}]   ;;  %s1892_s5 = inlined_call_operand.vmem [shape: f32[2,2,14,14], index: 5, kind: output, shape index: {}]  }
   0x1   :  { %s20_s20 = sshll.u32 %s1888_s1, 4  ;;  %s21_s20 = int_to_ptr.vmem [resolvable:$true] %s20_s20 }
   0x2   :  { %12 = vsyncpa [#allocation6], 0  ;;  %s29_s23 = sshll.u32 %s1889_s2, 4  ;;  %s1109_s24 = smov [#allocation3]   ;;  %s30_s23 = int_to_ptr.vmem [resolvable:$true] %s29_s23 }
   0x3   :  { %23 = dma.vmem_to_smem %s21_s20, 16, %s1109_s24, [#allocation4]  }
   0x4   :  { %s1110_s25 = smov [#allocation5]  }
   0x5   :  { %32 = dma.vmem_to_smem %s30_s23, 16, %s1110_s25, [#allocation6]  }
   0x6   :  { %1105 = dma.done.wait [#allocation4], 16  }
   0x7   :  { %1106 = vsyncadd [#allocation4], 4294967280 }
   0x8   :  { %1107 = dma.done.wait [#allocation6], 16  }
   0x9   :  { %1108 = vsyncadd [#allocation6], 4294967280 }
   0xa   :  { %45 = sfence }
   0xb   :  { %s992_s26 = sld [smem:[#allocation3 + $0x2]]  ;;  %v1152_v0 = vld [vmem:[%s1887_s0] sm:$0xff]  ;;  %s1111_s2 = smov 126   ;;  %v1170_v7 = vld [vmem:[%s1887_s0 + $0x8] sm:$0xff]  ;;  %v1257_v38 = vld [vmem:[%s1887_s0 + $0x10] sm:$0xff]  ;;  %vm450_vm0 = vcmask 1046528  }
   0xc   :  { %s991_s27 = sld [smem:[#allocation3 + $0x13]]  ;;  %s1112_s7 = smov 127   ;;  %v1265_v40 = vld [vmem:[%s1887_s0 + $0x18] sm:$0xff]  ;;  %vm481_vm1 = vcmask 111616   ;;  %vm460_vm2 = vcmask 1045504   ;;  %vm479_vm3 = vcmask 113664  }
   0xd   :  { %s990_s28 = sld [smem:[#allocation3 + $0x1]] }
   0xe   :  { %s996_s8 = sld [smem:[#allocation3 + $0x4]] }
   0xf   :  { %s993_s9 = sld [smem:[#allocation3 + $0x14]] }
  0x10   :  { %s997_s10 = sld [smem:[#allocation3 + $0x16]] }
  0x11   :  { %v1154_v1 = vstv %s992_s26  ;;  %s999_s11 = sld [smem:[#allocation3 + $0x17]] }
  0x12   :  { %v90_v2 = vmul.f32 %v1154_v1, %v1152_v0  ;;  %v1158_v3 = vstv %s991_s27  ;;  %v91_v8 = vmul.f32 %v1154_v1, %v1170_v7  ;;  %s998_s12 = sld [smem:[#allocation3 + $0x5]] }
  0x13   :  { %v76_v4 = vmul.f32 %v1158_v3, %v1152_v0  ;;  %v1162_v5 = vstv %s990_s28  ;;  %v77_v9 = vmul.f32 %v1158_v3, %v1170_v7  ;;  %s1002_s13 = sld [smem:[#allocation3 + $0x7]] }
  0x14   :  { %94 = vrot.lane.b32.xlu2 %v90_v2, %s1111_s2  ;;  %v62_v6 = vmul.f32 %v1162_v5, %v1152_v0  ;;  %v63_v10 = vmul.f32 %v1162_v5, %v1170_v7  ;;  %v1182_v11 = vstv %s996_s8  ;;  %s1004_s14 = sld [smem:[#allocation3 + $0x8]] }
  0x15   :  { %80 = vrot.lane.b32.xlu1 %v76_v4, %s1112_s7  ;;  %v1185_v12 = vstv %s993_s9  ;;  %v126_v13 = vmul.f32 %v1182_v11, %v1152_v0  ;;  %v127_v19 = vmul.f32 %v1182_v11, %v1170_v7  ;;  %s1003_s15 = sld [smem:[#allocation3 + $0x19]] }
  0x16   :  { %66 = vrot.lane.b32.xlu0 %v62_v6, %s1112_s7  ;;  %v105_v14 = vmul.f32 %v1185_v12, %v1170_v7  ;;  %v104_v15 = vmul.f32 %v1185_v12, %v1152_v0  ;;  %v1195_v16 = vstv %s997_s10  ;;  %s1005_s16 = sld [smem:[#allocation3 + $0x1a]] }
  0x17   :  { %v141_v17 = vmul.f32 %v1195_v16, %v1170_v7  ;;  %v140_v18 = vmul.f32 %v1195_v16, %v1152_v0  ;;  %v1206_v20 = vstv %s999_s11  ;;  %s1009_s17 = sld [smem:[#allocation3 + $0x1c]] }
  0x18   :  { %v1209_v21 = vstv %s998_s12  ;;  %v168_v22 = vmul.f32 %v1206_v20, %v1152_v0  ;;  %v169_v28 = vmul.f32 %v1206_v20, %v1170_v7  ;;  %s1008_s18 = sld [smem:[#allocation3 + $0xa]] }
  0x19   :  { %v155_v23 = vmul.f32 %v1209_v21, %v1170_v7  ;;  %v154_v24 = vmul.f32 %v1209_v21, %v1152_v0  ;;  %v1219_v25 = vstv %s1002_s13  ;;  %s1010_s21 = sld [smem:[#allocation3 + $0xb]] }
  0x1a   :  { %v191_v26 = vmul.f32 %v1219_v25, %v1170_v7  ;;  %v190_v27 = vmul.f32 %v1219_v25, %v1152_v0  ;;  %v1230_v29 = vstv %s1004_s14  ;;  %s1014_s24 = sld [smem:[#allocation3 + $0xd]] }
  0x1b   :  { %v1233_v30 = vstv %s1003_s15  ;;  %v218_v31 = vmul.f32 %v1230_v29, %v1152_v0  ;;  %v219_v37 = vmul.f32 %v1230_v29, %v1170_v7  ;;  %s1011_s25 = sld [smem:[#allocation3 + $0x1d]] }
  0x1c   :  { %96 = vrot.lane.b32.xlu2 %v91_v8, %s1111_s2  ;;  %v205_v32 = vmul.f32 %v1233_v30, %v1170_v7  ;;  %v204_v33 = vmul.f32 %v1233_v30, %v1152_v0  ;;  %v1243_v34 = vstv %s1005_s16  ;;  %s1015_s26 = sld [smem:[#allocation3 + $0x1f]] }
  0x1d   :  { %82 = vrot.lane.b32.xlu1 %v77_v9, %s1112_s7  ;;  %v233_v35 = vmul.f32 %v1243_v34, %v1170_v7  ;;  %v232_v36 = vmul.f32 %v1243_v34, %v1152_v0  ;;  %v1259_v39 = vstv %s1009_s17  ;;  %s1017_s27 = sld [smem:[#allocation3 + $0x20]] }
  0x1e   :  { %68 = vrot.lane.b32.xlu0 %v63_v10, %s1112_s7  ;;  %v1267_v41 = vstv %s1008_s18  ;;  %v272_v42 = vmul.f32 %v1257_v38, %v1259_v39  ;;  %v273_v48 = vmul.f32 %v1265_v40, %v1259_v39  ;;  %s1016_s28 = sld [smem:[#allocation3 + $0xe]] }
  0x1f   :  { %v259_v43 = vmul.f32 %v1265_v40, %v1267_v41  ;;  %v258_v44 = vmul.f32 %v1257_v38, %v1267_v41  ;;  %v1277_v45 = vstv %s1010_s21  ;;  %s1020_s1 = sld [smem:[#allocation3 + $0x10]] }
  0x20   :  { %v287_v46 = vmul.f32 %v1265_v40, %v1277_v45  ;;  %v286_v47 = vmul.f32 %v1257_v38, %v1277_v45  ;;  %v1288_v49 = vstv %s1014_s24  ;;  %s1022_s29 = sld [smem:[#allocation3 + $0x11]] }
  0x21   :  { %v1291_v50 = vstv %s1011_s25  ;;  %v326_v51 = vmul.f32 %v1257_v38, %v1288_v49  ;;  %v327_v57 = vmul.f32 %v1265_v40, %v1288_v49  ;;  %s1021_s30 = sld [smem:[#allocation3 + $0x22]] }
  0x22   :  { %v301_v52 = vmul.f32 %v1265_v40, %v1291_v50  ;;  %v300_v53 = vmul.f32 %v1257_v38, %v1291_v50  ;;  %v1301_v54 = vstv %s1015_s26  ;;  %s52_s6 = sld [smem:[#allocation3]] }
  0x23   :  { %v341_v55 = vmul.f32 %v1265_v40, %v1301_v54  ;;  %v340_v56 = vmul.f32 %v1257_v38, %v1301_v54  ;;  %v1312_v58 = vstv %s1017_s27  ;;  %s1023_s8 = sld [smem:[#allocation3 + $0x23]] }
  0x24   :  { %130 = vrot.lane.b32.xlu2 %v126_v13, %s1112_s7  ;;  %v1315_v60 = vstv %s1016_s28  ;;  %v368_v61 = vmul.f32 %v1257_v38, %v1312_v58  ;;  %v369_v9 = vmul.f32 %v1265_v40, %v1312_v58  ;;  %s989_s9 = sld [smem:[#allocation3 + $0x12]] }
  0x25   :  { %110 = vrot.lane.b32.xlu1 %v105_v14, %s1111_s2  ;;  %v355_v62 = vmul.f32 %v1265_v40, %v1315_v60  ;;  %v354_v63 = vmul.f32 %v1257_v38, %v1315_v60  ;;  %v1325_v2 = vstv %s1020_s1  ;;  %s995_s14 = sld [smem:[#allocation3 + $0x15]] }
  0x26   :  { %108 = vrot.lane.b32.xlu0 %v104_v15, %s1111_s2  ;;  %v395_v6 = vmul.f32 %v1265_v40, %v1325_v2  ;;  %v394_v8 = vmul.f32 %v1257_v38, %v1325_v2  ;;  %v1336_v10 = vstv %s1022_s29  ;;  %s994_s15 = sld [smem:[#allocation3 + $0x3]] }
  0x27   :  { %v1341_v14 = vstv %s1021_s30  ;;  %v422_v15 = vmul.f32 %v1257_v38, %v1336_v10  ;;  %s1000_s16 = sld [smem:[#allocation3 + $0x6]] }
  0x28   :  { %s1012_s21 = sld [smem:[#allocation3 + $0xc]] }
  0x29   :  { %s1013_s22 = sld [smem:[#allocation3 + $0x1e]] }
  0x2a   :  { %s1001_s23 = sld [smem:[#allocation3 + $0x18]] }
  0x2b   :  { %s1007_s24 = sld [smem:[#allocation3 + $0x1b]] }
  0x2c   :  { %146 = vrot.lane.b32.xlu2 %v141_v17, %s1112_s7  ;;  %v409_v17 = vmul.f32 %v1265_v40, %v1341_v14  ;;  %s1595_s25 = sld [smem:[#allocation3 + $0x21]] }
  0x2d   :  { %144 = vrot.lane.b32.xlu1 %v140_v18, %s1112_s7  ;;  %v408_v18 = vmul.f32 %v1257_v38, %v1341_v14  ;;  %s1601_s26 = sld [smem:[#allocation3 + $0xf]] }
  0x2e   :  { %132 = vrot.lane.b32.xlu0 %v127_v19, %s1112_s7  ;;  %v1349_v19 = vstv %s52_s6  ;;  %s1024_s27 = sld [smem:[#allocation5 + $0x1]] }
  0x2f   :  { %s1689_s6 = sld [smem:[#allocation5]] }
  0x34   :  { %172 = vrot.lane.b32.xlu2 %v168_v22, %s1111_s2  ;;  %v54_v22 = vmul.f32 %v1349_v19, %v1152_v0 }
  0x35   :  { %160 = vrot.lane.b32.xlu1 %v155_v23, %s1111_s2  ;;  %v1355_v23 = vstv %s1023_s8 }
  0x36   :  { %158 = vrot.lane.b32.xlu0 %v154_v24, %s1111_s2 }
  0x3c   :  { %196 = vrot.lane.b32.xlu2 %v191_v26, %s1112_s7 }
  0x3d   :  { %194 = vrot.lane.b32.xlu1 %v190_v27, %s1112_s7 }
  0x3e   :  { %174 = vrot.lane.b32.xlu0 %v169_v28, %s1111_s2  ;;  %v437_v28 = vmul.f32 %v1265_v40, %v1355_v23 }
  0x44   :  { %222 = vrot.lane.b32.xlu2 %v218_v31, %s1111_s2 }
  0x45   :  { %210 = vrot.lane.b32.xlu1 %v205_v32, %s1112_s7  ;;  %v436_v32 = vmul.f32 %v1257_v38, %v1355_v23 }
  0x46   :  { %208 = vrot.lane.b32.xlu0 %v204_v33, %s1112_s7  ;;  %v423_v33 = vmul.f32 %v1265_v40, %v1336_v10 }
  0x4c   :  { %238 = vrot.lane.b32.xlu2 %v233_v35, %s1111_s2 }
  0x4d   :  { %236 = vrot.lane.b32.xlu1 %v232_v36, %s1111_s2  ;;  %v55_v36 = vmul.f32 %v1349_v19, %v1170_v7 }
  0x4e   :  { %224 = vrot.lane.b32.xlu0 %v219_v37, %s1111_s2  ;;  %v1375_v37 = vld [vmem:[%s1887_s0 + $0x20] sm:$0xff] }
  0x54   :  { %276 = vrot.lane.b32.xlu2 %v272_v42, %s1112_s7 }
  0x55   :  { %264 = vrot.lane.b32.xlu1 %v259_v43, %s1112_s7  ;;  %v1381_v43 = vld [vmem:[%s1887_s0 + $0x28] sm:$0xff] }
  0x56   :  { %262 = vrot.lane.b32.xlu0 %v258_v44, %s1112_s7 }
  0x5c   :  { %292 = vrot.lane.b32.xlu2 %v287_v46, %s1111_s2  ;;  %v1383_v46 = vstv %s989_s9 }
  0x5d   :  { %290 = vrot.lane.b32.xlu1 %v286_v47, %s1111_s2  ;;  %1903 = vst [vmem:[#allocation9_spill] sm:$0xff] %v1383_v46 }
  0x5e   :  { %278 = vrot.lane.b32.xlu0 %v273_v48, %s1112_s7  ;;  %v545_v48 = vmul.f32 %v1375_v37, %v1158_v3 }
  0x64   :  { %330 = vrot.lane.b32.xlu2 %v326_v51, %s1112_s7 }
  0x65   :  { %306 = vrot.lane.b32.xlu1 %v301_v52, %s1111_s2  ;;  %v532_v52 = vmul.f32 %v1381_v43, %v1162_v5 }
  0x66   :  { %304 = vrot.lane.b32.xlu0 %v300_v53, %s1111_s2  ;;  %v59_v53 = vmul.f32 %v1383_v46, %v1170_v7 }
  0x6c   :  { %346 = vrot.lane.b32.xlu2 %v341_v55, %s1112_s7  ;;  %v531_v55 = vmul.f32 %v1375_v37, %v1162_v5 }
  0x6d   :  { %344 = vrot.lane.b32.xlu1 %v340_v56, %s1112_s7  ;;  %v58_v56 = vmul.f32 %v1383_v46, %v1152_v0 }
  0x6e   :  { %332 = vrot.lane.b32.xlu0 %v327_v57, %s1112_s7  ;;  %v95_v59 = vpop.permute.xlu2 %94 }
  0x74   :  { %372 = vrot.lane.b32.xlu2 %v368_v61, %s1111_s2 }
  0x75   :  { %360 = vrot.lane.b32.xlu1 %v355_v62, %s1111_s2 }
  0x76   :  { %358 = vrot.lane.b32.xlu0 %v354_v63, %s1111_s2  ;;  %v97_v4 = vpop.permute.xlu2 %96 }
  0x7c   :  { %400 = vrot.lane.b32.xlu2 %v395_v6, %s1112_s7 }
  0x7d   :  { %398 = vrot.lane.b32.xlu1 %v394_v8, %s1112_s7  ;;  %v560_v8 = vmul.f32 %v1381_v43, %v1154_v1 }
  0x7e   :  { %374 = vrot.lane.b32.xlu0 %v369_v9, %s1111_s2  ;;  %v1339_v13 = vpop.permute.xlu2 %130 }
  0x84   :  { %426 = vrot.lane.b32.xlu2 %v422_v15, %s1111_s2  ;;  %v559_v15 = vmul.f32 %v1375_v37, %v1154_v1  ;;  %v595_v1 = vmul.f32 %v1375_v37, %v1182_v11 }
  0x85   :  { %414 = vrot.lane.b32.xlu1 %v409_v17, %s1112_s7  ;;  %v546_v17 = vmul.f32 %v1381_v43, %v1158_v3  ;;  %v574_v3 = vmul.f32 %v1381_v43, %v1185_v12 }
  0x86   :  { %412 = vrot.lane.b32.xlu0 %v408_v18, %s1112_s7  ;;  %v1358_v24 = vpop.permute.xlu2 %146 }
  0x87   :  { %v81_v26 = vpop.permute.xlu1 %80 }
  0x88   :  { %v67_v27 = vpop.permute.xlu0 %66  ;;  %v86_v62 = vadd.f32 %v81_v26, %v58_v56 }
  0x89   :  { %v72_v31 = vadd.f32 %v67_v27, %v54_v22  ;;  %v1419_v27 = vstv %s994_s15 }
  0x8a   :  { %1905 = vst [vmem:[#allocation11_spill] sm:$0xff] %v1419_v27 }
  0x8b   :  { %v1366_v35 = vadd.f32 %v95_v59, %v72_v31 }
  0x8c   :  { %442 = vrot.lane.b32.xlu2 %v437_v28, %s1111_s2 }
  0x8d   :  { %440 = vrot.lane.b32.xlu1 %v436_v32, %s1111_s2 }
  0x8e   :  { %428 = vrot.lane.b32.xlu0 %v423_v33, %s1111_s2  ;;  %v173_v42 = vpop.permute.xlu2 %172  ;;  %v119_v33 = vmul.f32 %v1419_v27, %v1170_v7 }
  0x8f   :  { %v83_v44 = vpop.permute.xlu1 %82 }
  0x90   :  { %v69_v47 = vpop.permute.xlu0 %68  ;;  %v87_v59 = vadd.f32 %v83_v44, %v59_v53  ;;  %v118_v44 = vmul.f32 %v1419_v27, %v1152_v0  ;;  %v1582_v27 = vstv %s1001_s23 }
  0x91   :  { %v73_v51 = vadd.f32 %v69_v47, %v55_v36  ;;  %v573_v36 = vmul.f32 %v1375_v37, %v1185_v12  ;;  %v610_v12 = vmul.f32 %v1381_v43, %v1195_v16 }
  0x93   :  { %v1395_v57 = vadd.f32 %v97_v4, %v73_v51  ;;  %v1406_v4 = vstv %s995_s14 }
  0x94   :  { %549 = vrot.lane.b32.xlu2 %v545_v48, %s1112_s7  ;;  %1904 = vst [vmem:[#allocation10_spill] sm:$0xff] %v1406_v4  ;;  %v122_v18 = vmul.f32 %v1406_v4, %v1152_v0 }
  0x95   :  { %537 = vrot.lane.b32.xlu1 %v532_v52, %s1112_s7 }
  0x96   :  { %535 = vrot.lane.b32.xlu0 %v531_v55, %s1112_s7  ;;  %v1400_v61 = vpop.permute.xlu2 %196  ;;  %v1443_v55 = vstv %s1000_s16 }
  0x97   :  { %v111_v63 = vpop.permute.xlu1 %110 }
  0x98   :  { %v1402_v6 = vadd.f32 %v111_v63, %v87_v59  ;;  %v109_v5 = vpop.permute.xlu0 %108  ;;  %v609_v59 = vmul.f32 %v1375_v37, %v1195_v16  ;;  %v182_v63 = vmul.f32 %v1443_v55, %v1152_v0 }
  0x99   :  { %v1408_v9 = vadd.f32 %v109_v5, %v86_v62  ;;  %v596_v62 = vmul.f32 %v1381_v43, %v1182_v11  ;;  %v637_v11 = vmul.f32 %v1375_v37, %v1206_v20 }
  0x9c   :  { %565 = vrot.lane.b32.xlu2 %v560_v8, %s1111_s2 }
  0x9d   :  { %563 = vrot.lane.b32.xlu1 %v559_v15, %s1111_s2 }
  0x9e   :  { %551 = vrot.lane.b32.xlu0 %v546_v17, %s1112_s7  ;;  %v223_v22 = vpop.permute.xlu2 %222 }
  0x9f   :  { %v145_v26 = vpop.permute.xlu1 %144 }
  0xa0   :  { %v150_v28 = vadd.f32 %v145_v26, %v122_v18  ;;  %v133_v31 = vpop.permute.xlu0 %132  ;;  %v624_v26 = vmul.f32 %v1381_v43, %v1209_v21 }
  0xa1   :  { %v137_v47 = vadd.f32 %v133_v31, %v119_v33  ;;  %v623_v31 = vmul.f32 %v1375_v37, %v1209_v21  ;;  %v660_v33 = vmul.f32 %v1381_v43, %v1219_v25  ;;  %v638_v21 = vmul.f32 %v1381_v43, %v1206_v20 }
  0xa2   :  { %v1425_v32 = vadd.f32 %v173_v42, %v150_v28  ;;  %v136_v42 = vadd.f32 %v1339_v13, %v118_v44  ;;  %v123_v13 = vmul.f32 %v1406_v4, %v1170_v7  ;;  %v673_v20 = vmul.f32 %v1375_v37, %v1233_v30 }
  0xa4   :  { %599 = vrot.lane.b32.xlu2 %v595_v1, %s1112_s7  ;;  %v151_v8 = vadd.f32 %v1358_v24, %v123_v13  ;;  %v1519_v13 = vld [vmem:[%s1887_s0 + $0x30] sm:$0xff] }
  0xa5   :  { %579 = vrot.lane.b32.xlu1 %v574_v3, %s1111_s2 }
  0xa6   :  { %577 = vrot.lane.b32.xlu0 %v573_v36, %s1111_s2  ;;  %v1436_v48 = vpop.permute.xlu2 %238 }
  0xa7   :  { %v161_v51 = vpop.permute.xlu1 %160 }
  0xa8   :  { %v1439_v52 = vadd.f32 %v161_v51, %v137_v47  ;;  %v159_v53 = vpop.permute.xlu0 %158 }
  0xa9   :  { %v1445_v56 = vadd.f32 %v159_v53, %v136_v42  ;;  %v687_v42 = vmul.f32 %v1375_v37, %v1230_v29 }
  0xac   :  { %615 = vrot.lane.b32.xlu2 %v610_v12, %s1112_s7 }
  0xad   :  { %613 = vrot.lane.b32.xlu1 %v609_v59, %s1112_s7  ;;  %v702_v59 = vmul.f32 %v1381_v43, %v1243_v34 }
  0xae   :  { %601 = vrot.lane.b32.xlu0 %v596_v62, %s1112_s7  ;;  %v1458_v5 = vpop.permute.xlu2 %276  ;;  %v701_v62 = vmul.f32 %v1375_v37, %v1243_v34  ;;  %v1527_v34 = vld [vmem:[%s1887_s0 + $0x38] sm:$0xff]  ;;  %s1006_s0 = sld [smem:[#allocation3 + $0x9]] }
  0xaf   :  { %v195_v16 = vpop.permute.xlu1 %194 }
  0xb0   :  { %v200_v15 = vadd.f32 %v195_v16, %v182_v63  ;;  %v175_v17 = vpop.permute.xlu0 %174  ;;  %v741_v16 = vmul.f32 %v1519_v13, %v1259_v39 }
  0xb1   :  { %v1463_v18 = vadd.f32 %v175_v17, %v151_v8  ;;  %v727_v17 = vmul.f32 %v1519_v13, %v1267_v41 }
  0xb2   :  { %v1467_v28 = vadd.f32 %v223_v22, %v200_v15  ;;  %v659_v22 = vmul.f32 %v1375_v37, %v1219_v25  ;;  %v674_v25 = vmul.f32 %v1381_v43, %v1233_v30  ;;  %v688_v30 = vmul.f32 %v1381_v43, %v1230_v29 }
  0xb3   :  { %v728_v15 = vmul.f32 %v1527_v34, %v1267_v41  ;;  %v755_v41 = vmul.f32 %v1519_v13, %v1277_v45 }
  0xb4   :  { %641 = vrot.lane.b32.xlu2 %v637_v11, %s1111_s2 }
  0xb5   :  { %629 = vrot.lane.b32.xlu1 %v624_v26, %s1111_s2 }
  0xb6   :  { %627 = vrot.lane.b32.xlu0 %v623_v31, %s1111_s2  ;;  %v1474_v24 = vpop.permute.xlu2 %292 }
  0xb7   :  { %v1476_v1 = vpop.permute.xlu1 %210 }
  0xb8   :  { %v1478_v3 = vpop.permute.xlu0 %208 }
  0xbc   :  { %665 = vrot.lane.b32.xlu2 %v660_v33, %s1112_s7  ;;  %v756_v33 = vmul.f32 %v1527_v34, %v1277_v45 }
  0xbd   :  { %663 = vrot.lane.b32.xlu1 %v659_v22, %s1112_s7  ;;  %v742_v22 = vmul.f32 %v1527_v34, %v1259_v39 }
  0xbe   :  { %643 = vrot.lane.b32.xlu0 %v638_v21, %s1111_s2  ;;  %v1489_v36 = vpop.permute.xlu2 %330  ;;  %v1555_v21 = vstv %s1012_s21 }
  0xbf   :  { %v1491_v44 = vpop.permute.xlu1 %236  ;;  %1906 = vst [vmem:[#allocation12_spill] sm:$0xff] %v1555_v21  ;;  %v315_v39 = vmul.f32 %v1265_v40, %v1555_v21 }
  0xc0   :  { %v1493_v47 = vpop.permute.xlu0 %224 }
  0xc4   :  { %691 = vrot.lane.b32.xlu2 %v687_v42, %s1111_s2 }
  0xc5   :  { %679 = vrot.lane.b32.xlu1 %v674_v25, %s1112_s7  ;;  %v1561_v25 = vstv %s1006_s0 }
  0xc6   :  { %677 = vrot.lane.b32.xlu0 %v673_v20, %s1112_s7  ;;  %v1504_v51 = vpop.permute.xlu2 %346  ;;  %1907 = vst [vmem:[#allocation13_spill] sm:$0xff] %v1561_v25  ;;  %v247_v45 = vmul.f32 %v1265_v40, %v1561_v25 }
  0xc7   :  { %v265_v53 = vpop.permute.xlu1 %264 }
  0xc8   :  { %v1506_v12 = vpop.permute.xlu0 %262 }
  0xcc   :  { %707 = vrot.lane.b32.xlu2 %v702_v59, %s1111_s2 }
  0xcd   :  { %705 = vrot.lane.b32.xlu1 %v701_v62, %s1111_s2  ;;  %v809_v62 = vmul.f32 %v1519_v13, %v1301_v54 }
  0xce   :  { %693 = vrot.lane.b32.xlu0 %v688_v30, %s1111_s2  ;;  %v1522_v63 = vpop.permute.xlu2 %372  ;;  %v314_v30 = vmul.f32 %v1257_v38, %v1555_v21 }
  0xcf   :  { %v1529_v8 = vpop.permute.xlu1 %290 }
  0xd0   :  { %v1531_v29 = vpop.permute.xlu0 %278  ;;  %v316_v21 = vadd.f32 %v314_v30, %v1445_v56  ;;  %v187_v56 = vmul.f32 %v1582_v27, %v1170_v7  ;;  %v824_v30 = vmul.f32 %v1527_v34, %v1315_v60 }
  0xd4   :  { %745 = vrot.lane.b32.xlu2 %v741_v16, %s1112_s7  ;;  %v796_v16 = vmul.f32 %v1527_v34, %v1288_v49 }
  0xd5   :  { %733 = vrot.lane.b32.xlu1 %v728_v15, %s1112_s7  ;;  %v1573_v15 = vstv %s1013_s22 }
  0xd6   :  { %731 = vrot.lane.b32.xlu0 %v727_v17, %s1112_s7  ;;  %v1542_v11 = vpop.permute.xlu2 %400  ;;  %v795_v17 = vmul.f32 %v1519_v13, %v1288_v49  ;;  %v320_v4 = vmul.f32 %v1257_v38, %v1573_v15 }
  0xd7   :  { %v1544_v26 = vpop.permute.xlu1 %306 }
  0xd8   :  { %v1546_v31 = vpop.permute.xlu0 %304 }
  0xdc   :  { %761 = vrot.lane.b32.xlu2 %v756_v33, %s1111_s2  ;;  %v246_v33 = vmul.f32 %v1257_v38, %v1561_v25 }
  0xdd   :  { %759 = vrot.lane.b32.xlu1 %v755_v41, %s1111_s2  ;;  %v249_v41 = vadd.f32 %v247_v45, %v1395_v57  ;;  %v1591_v57 = vstv %s1007_s24 }
  0xde   :  { %747 = vrot.lane.b32.xlu0 %v742_v22, %s1112_s7  ;;  %v1559_v42 = vpop.permute.xlu2 %426  ;;  %v317_v22 = vadd.f32 %v315_v39, %v1439_v52  ;;  %v336_v52 = vadd.f32 %v1489_v36, %v316_v21  ;;  %v248_v45 = vadd.f32 %v246_v33, %v1366_v35  ;;  %v322_v35 = vadd.f32 %v320_v4, %v1425_v32 }
  0xdf   :  { %v345_v20 = vpop.permute.xlu1 %344  ;;  %v269_v46 = vadd.f32 %v265_v53, %v249_v41  ;;  %v321_v53 = vmul.f32 %v1265_v40, %v1573_v15  ;;  %v810_v41 = vmul.f32 %v1527_v34, %v1301_v54  ;;  %v252_v4 = vmul.f32 %v1257_v38, %v1591_v57 }
  0xe0   :  { %v333_v59 = vpop.permute.xlu0 %332  ;;  %v268_v36 = vadd.f32 %v1506_v12, %v248_v45 }
  0xe1   :  { %v337_v49 = vadd.f32 %v333_v59, %v317_v22  ;;  %v253_v22 = vmul.f32 %v1265_v40, %v1591_v57 }
  0xe2   :  { %v296_v32 = vadd.f32 %v1529_v8, %v268_v36 }
  0xe4   :  { %813 = vrot.lane.b32.xlu2 %v809_v62, %s1112_s7 }
  0xe5   :  { %801 = vrot.lane.b32.xlu1 %v796_v16, %s1112_s7  ;;  %v823_v16 = vmul.f32 %v1519_v13, %v1315_v60 }
  0xe6   :  { %799 = vrot.lane.b32.xlu0 %v795_v17, %s1112_s7  ;;  %v1589_v25 = vpop.permute.xlu2 %442  ;;  %v297_v17 = vadd.f32 %v1474_v24, %v269_v46  ;;  %v323_v46 = vadd.f32 %v321_v53, %v1463_v18  ;;  %v215_v24 = vadd.f32 %v1476_v1, %v187_v56  ;;  %v1633_v18 = vstv %s1595_s25 }
  0xe7   :  { %v361_v39 = vpop.permute.xlu1 %360  ;;  %v254_v53 = vadd.f32 %v252_v4, %v1408_v9  ;;  %v863_v56 = vmul.f32 %v1519_v13, %v1325_v2  ;;  %v837_v9 = vmul.f32 %v1519_v13, %v1312_v58 }
  0xe8   :  { %v365_v59 = vadd.f32 %v361_v39, %v337_v49  ;;  %v359_v62 = vpop.permute.xlu0 %358  ;;  %v350_v49 = vadd.f32 %v345_v20, %v322_v35  ;;  %v351_v8 = vadd.f32 %v1504_v51, %v323_v46  ;;  %v243_v35 = vadd.f32 %v1436_v48, %v215_v24 }
  0xe9   :  { %v364_v21 = vadd.f32 %v359_v62, %v336_v52  ;;  %v255_v52 = vadd.f32 %v253_v22, %v1402_v6  ;;  %v1637_v62 = vstv %s1601_s26  ;;  %v838_v6 = vmul.f32 %v1527_v34, %v1312_v58 }
  0xea   :  { %v452_v33 = vrot.slane %v365_v59, 1  ;;  %v378_v45 = vadd.f32 %v1522_v63, %v350_v49  ;;  %v282_v63 = vadd.f32 %v1458_v5, %v254_v53  ;;  %v382_v48 = vmul.f32 %v1257_v38, %v1637_v62 }
  0xeb   :  { %v451_v39 = vrot.slane %v364_v21, 1  ;;  %v283_v51 = vadd.f32 %v1531_v29, %v255_v52  ;;  %v389_v21 = vmul.f32 %v1265_v40, %v1633_v18  ;;  %v383_v24 = vmul.f32 %v1265_v40, %v1637_v62  ;;  %v1026_v40 = vld [vmem:[%s1890_s3 + $0x18] sm:$0x3f] }
  0xec   :  { %v1617_v60 = vadd.f32 %v452_v33, %v297_v17  ;;  %829 = vrot.lane.b32.xlu2 %v824_v30, %s1111_s2  ;;  %v186_v30 = vmul.f32 %v1582_v27, %v1152_v0  ;;  %v485_v29 = vrot.slane %v378_v45, 1  ;;  %v864_v52 = vmul.f32 %v1527_v34, %v1325_v2 }
  0xed   :  { %v453_v54 = vsel %vm450_vm0, %v451_v39, %v452_v33  ;;  %827 = vrot.lane.b32.xlu1 %v823_v16, %s1111_s2  ;;  %v183_v16 = vmul.f32 %v1443_v55, %v1170_v7  ;;  %v311_v0 = vadd.f32 %v1544_v26, %v283_v51  ;;  %v310_v33 = vadd.f32 %v1546_v31, %v282_v63 }
  0xee   :  { %v1624_v12 = vadd.f32 %v453_v54, %v296_v32  ;;  %815 = vrot.lane.b32.xlu0 %v810_v41, %s1112_s7  ;;  %v1627_v20 = vpop.permute.xlu2 %549  ;;  %v214_v41 = vadd.f32 %v1478_v3, %v186_v30  ;;  %v391_v22 = vadd.f32 %v389_v21, %v243_v35  ;;  %v388_v32 = vmul.f32 %v1257_v38, %v1633_v18 }
  0xef   :  { %v399_v59 = vpop.permute.xlu1 %398  ;;  %v201_v31 = vadd.f32 %v1400_v61, %v183_v16  ;;  %v878_v54 = vmul.f32 %v1527_v34, %v1341_v14  ;;  %v877_v61 = vmul.f32 %v1519_v13, %v1341_v14  ;;  %v1683_v45 = vstv %s1891_s4 }
  0xf0   :  { %v375_v1 = vpop.permute.xlu0 %374  ;;  %v242_v39 = vadd.f32 %v1491_v44, %v214_v41  ;;  %v509_v2 = vmul.f32 %v1026_v40, %v1683_v45  ;;  %v905_v35 = vmul.f32 %v1519_v13, %v1355_v23  ;;  %v1723_v41 = vstv %s1689_s6 }
  0xf1   :  { %v379_v36 = vadd.f32 %v375_v1, %v351_v8  ;;  %v229_v3 = vadd.f32 %v1493_v47, %v201_v31  ;;  %v384_v8 = vadd.f32 %v382_v48, %v1467_v28 }
  0xf2   :  { %v390_v28 = vadd.f32 %v388_v32, %v242_v39 }
  0xf3   :  { %v486_v17 = vrot.slane %v379_v36, 1  ;;  %v404_v38 = vadd.f32 %v399_v59, %v384_v8  ;;  %v385_v14 = vadd.f32 %v383_v24, %v229_v3 }
  0xf4   :  { %867 = vrot.lane.b32.xlu2 %v863_v56, %s1112_s7 }
  0xf5   :  { %v487_v5 = vsel %vm450_vm0, %v485_v29, %v486_v17  ;;  %v491_v58 = vadd.f32 %v486_v17, %v311_v0  ;;  %843 = vrot.lane.b32.xlu1 %v838_v6, %s1111_s2  ;;  %v405_v56 = vadd.f32 %v1542_v11, %v385_v14  ;;  %v432_v30 = vadd.f32 %v1559_v42, %v404_v38  ;;  %v473_v0 = vld [vmem:[%s1890_s3 + $0x8] sm:$0x3f] }
  0xf6   :  { %v490_v7 = vadd.f32 %v487_v5, %v310_v33  ;;  %841 = vrot.lane.b32.xlu0 %v837_v9, %s1111_s2  ;;  %v1663_v26 = vpop.permute.xlu2 %565  ;;  %v1025_v9 = vld [vmem:[%s1890_s3 + $0x10] sm:$0xff]  ;;  %v892_v11 = vmul.f32 %v1527_v34, %v1336_v10  ;;  %v891_v29 = vmul.f32 %v1519_v13, %v1336_v10  ;;  %v472_v33 = vld [vmem:[%s1890_s3] sm:$0xff]  ;;  %v524_v10 = vmul.f32 %v1381_v43, %v1349_v19 }
  0xf7   :  { %v415_v49 = vpop.permute.xlu1 %414  ;;  %v461_v17 = vrot.slane %v432_v30, 2  ;;  %v508_v5 = vmul.f32 %v1025_v9, %v1683_v45  ;;  %v476_v31 = vmul.f32 %v1683_v45, %v473_v0  ;;  %v1909_v9 = vld [vmem:[#allocation10_spill] sm:$0xff] }
  0xf8   :  { %v419_v4 = vadd.f32 %v415_v49, %v391_v22  ;;  %v413_v46 = vpop.permute.xlu0 %412 }
  0xf9   :  { %v418_v53 = vadd.f32 %v413_v46, %v390_v28  ;;  %v906_v28 = vmul.f32 %v1527_v34, %v1355_v23 }
  0xfa   :  { %v447_v44 = vadd.f32 %v1589_v25, %v419_v4  ;;  %v1691_v25 = vstv %s1024_s27  ;;  %v475_v4 = vmul.f32 %v1683_v45, %v472_v33 }
  0xfc   :  { %v495_v47 = vrot.slane %v447_v44, 2  ;;  %883 = vrot.lane.b32.xlu2 %v878_v54, %s1112_s7 }
  0xfd   :  { %881 = vrot.lane.b32.xlu1 %v877_v61, %s1112_s7 }
  0xfe   :  { %v500_v59 = vadd.f32 %v495_v47, %v491_v58  ;;  %869 = vrot.lane.b32.xlu0 %v864_v52, %s1112_s7  ;;  %v1696_v1 = vpop.permute.xlu2 %599 }
  0xff   :  { %v441_v51 = vpop.permute.xlu1 %440 }
 0x100   :  { %v504_v36 = vadd.f32 %v1691_v25, %v500_v59  ;;  %v446_v6 = vadd.f32 %v441_v51, %v418_v53  ;;  %v429_v63 = vpop.permute.xlu0 %428 }
 0x101   :  { %v433_v21 = vadd.f32 %v429_v63, %v405_v56 }
 0x102   :  { %v511_v42 = vadd.f32 %v509_v2, %v504_v36  ;;  %v494_v16 = vrot.slane %v446_v6, 2  ;;  %v1908_v2 = vld [vmem:[#allocation9_spill] sm:$0xff] }
 0x103   :  { %v462_v48 = vrot.slane %v433_v21, 2  ;;  %v528_v59 = vmul.f32 %v1381_v43, %v1908_v2  ;;  %v527_v53 = vmul.f32 %v1375_v37, %v1908_v2  ;;  %v591_v21 = vmul.f32 %v1375_v37, %v1909_v9 }
 0x104   :  { %1028 = vst.msk [vmem:[%s1892_s5 + $0x18] sm:$0x3f] %vm481_vm1, %v511_v42  ;;  %v496_v58 = vsel %vm460_vm2, %v494_v16, %v495_v47  ;;  %909 = vrot.lane.b32.xlu2 %v905_v35, %s1111_s2  ;;  %v523_v47 = vmul.f32 %v1375_v37, %v1349_v19 }
 0x105   :  { %v499_v22 = vadd.f32 %v496_v58, %v490_v7  ;;  %v463_v49 = vsel %vm460_vm2, %v461_v17, %v462_v48  ;;  %v467_v39 = vadd.f32 %v462_v48, %v1617_v60  ;;  %897 = vrot.lane.b32.xlu1 %v892_v11, %s1111_s2  ;;  %v770_v60 = vmul.f32 %v1527_v34, %v1291_v50  ;;  %v1910_v17 = vld [vmem:[#allocation11_spill] sm:$0xff] }
 0x106   :  { %v466_v32 = vadd.f32 %v463_v49, %v1624_v12  ;;  %895 = vrot.lane.b32.xlu0 %v891_v29, %s1111_s2  ;;  %v616_v46 = vpop.permute.xlu2 %615  ;;  %v769_v12 = vmul.f32 %v1519_v13, %v1291_v50  ;;  %v555_v51 = vadd.f32 %v1627_v20, %v527_v53  ;;  %v588_v33 = vmul.f32 %v1381_v43, %v1910_v17 }
 0x107   :  { %v503_v54 = vadd.f32 %v1691_v25, %v499_v22  ;;  %v471_v3 = vadd.f32 %v1723_v41, %v467_v39  ;;  %v538_v7 = vpop.permute.xlu1 %537  ;;  %v587_v20 = vmul.f32 %v1375_v37, %v1910_v17  ;;  %v592_v39 = vmul.f32 %v1381_v43, %v1909_v9 }
 0x108   :  { %v470_v24 = vadd.f32 %v1723_v41, %v466_v32  ;;  %v542_v8 = vadd.f32 %v538_v7, %v524_v10  ;;  %v536_v61 = vpop.permute.xlu0 %535 }
 0x109   :  { %v510_v44 = vadd.f32 %v508_v5, %v503_v54  ;;  %v478_v52 = vadd.f32 %v476_v31, %v471_v3  ;;  %v541_v50 = vadd.f32 %v536_v61, %v523_v47  ;;  %v605_v58 = vadd.f32 %v1696_v1, %v587_v20 }
 0x10a   :  { %v477_v38 = vadd.f32 %v475_v4, %v470_v24  ;;  %v570_v40 = vadd.f32 %v1663_v26, %v542_v8  ;;  %v620_v32 = vadd.f32 %v616_v46, %v592_v39  ;;  %v1911_v46 = vld [vmem:[#allocation13_spill] sm:$0xff]  ;;  %v789_v39 = vmul.f32 %v1519_v13, %v1573_v15 }
 0x10b   :  { %1027 = vst.msk [vmem:[%s1892_s5 + $0x10] sm:$0xff] %vm479_vm3, %v510_v44 }
 0x10c   :  { %480 = vst.msk [vmem:[%s1892_s5] sm:$0xff] %vm479_vm3, %v477_v38  ;;  %775 = vrot.lane.b32.xlu2 %v770_v60, %s1111_s2 }
 0x10d   :  { %482 = vst.msk [vmem:[%s1892_s5 + $0x8] sm:$0x3f] %vm481_vm1, %v478_v52  ;;  %773 = vrot.lane.b32.xlu1 %v769_v12, %s1111_s2 }
 0x10e   :  { %911 = vrot.lane.b32.xlu0 %v906_v28, %s1111_s2  ;;  %v642_v19 = vpop.permute.xlu2 %641 }
 0x10f   :  { %v564_v23 = vpop.permute.xlu1 %563 }
 0x110   :  { %v569_v26 = vadd.f32 %v564_v23, %v541_v50  ;;  %v552_v14 = vpop.permute.xlu0 %551  ;;  %v1912_v23 = vld [vmem:[#allocation12_spill] sm:$0xff] }
 0x111   :  { %v556_v56 = vadd.f32 %v552_v14, %v528_v59  ;;  %v784_v14 = vmul.f32 %v1527_v34, %v1912_v23 }
 0x116   :  { %v1766_v30 = vpop.permute.xlu2 %665 }
 0x117   :  { %v580_v36 = vpop.permute.xlu1 %579 }
 0x118   :  { %v1769_v6 = vadd.f32 %v580_v36, %v556_v56  ;;  %v578_v63 = vpop.permute.xlu0 %577 }
 0x119   :  { %v1771_v35 = vadd.f32 %v578_v63, %v555_v51  ;;  %v783_v63 = vmul.f32 %v1519_v13, %v1912_v23 }
 0x11e   :  { %v1775_v11 = vpop.permute.xlu2 %691 }
 0x11f   :  { %v614_v42 = vpop.permute.xlu1 %613 }
 0x120   :  { %v619_v16 = vadd.f32 %v614_v42, %v591_v21  ;;  %v602_v0 = vpop.permute.xlu0 %601  ;;  %v715_v42 = vmul.f32 %v1519_v13, %v1911_v46 }
 0x121   :  { %v606_v48 = vadd.f32 %v602_v0, %v588_v33 }
 0x122   :  { %v647_v29 = vadd.f32 %v642_v19, %v619_v16  ;;  %v716_v19 = vmul.f32 %v1527_v34, %v1911_v46 }
 0x124   :  { %v718_v2 = vadd.f32 %v716_v19, %v570_v40  ;;  %v791_v46 = vadd.f32 %v789_v39, %v647_v29 }
 0x126   :  { %v1781_v5 = vpop.permute.xlu2 %707 }
 0x127   :  { %v630_v10 = vpop.permute.xlu1 %629 }
 0x128   :  { %v634_v22 = vadd.f32 %v630_v10, %v606_v48  ;;  %v628_v31 = vpop.permute.xlu0 %627  ;;  %v717_v48 = vadd.f32 %v715_v42, %v569_v26 }
 0x129   :  { %v633_v49 = vadd.f32 %v628_v31, %v605_v58 }
 0x12a   :  { %v786_v53 = vadd.f32 %v784_v14, %v634_v22  ;;  %v790_v22 = vmul.f32 %v1527_v34, %v1573_v15 }
 0x12b   :  { %v785_v17 = vadd.f32 %v783_v63, %v633_v49 }
 0x12e   :  { %v1786_v4 = vpop.permute.xlu2 %745 }
 0x12f   :  { %v664_v54 = vpop.permute.xlu1 %663 }
 0x130   :  { %v644_v3 = vpop.permute.xlu0 %643 }
 0x131   :  { %v648_v7 = vadd.f32 %v644_v3, %v620_v32  ;;  %v722_v3 = vmul.f32 %v1527_v34, %v1591_v57 }
 0x133   :  { %v724_v19 = vadd.f32 %v722_v3, %v1769_v6 }
 0x136   :  { %v762_v24 = vpop.permute.xlu2 %761 }
 0x137   :  { %v1788_v8 = vpop.permute.xlu1 %679 }
 0x138   :  { %v1790_v61 = vpop.permute.xlu0 %677 }
 0x13e   :  { %v814_v60 = vpop.permute.xlu2 %813 }
 0x13f   :  { %v1792_v1 = vpop.permute.xlu1 %705  ;;  %v819_v14 = vadd.f32 %v814_v60, %v791_v46 }
 0x140   :  { %v694_v44 = vpop.permute.xlu0 %693 }
 0x146   :  { %v830_v52 = vpop.permute.xlu2 %829 }
 0x147   :  { %v734_v12 = vpop.permute.xlu1 %733 }
 0x148   :  { %v732_v38 = vpop.permute.xlu0 %731  ;;  %v738_v51 = vadd.f32 %v734_v12, %v718_v2  ;;  %v792_v12 = vadd.f32 %v790_v22, %v648_v7 }
 0x149   :  { %v737_v32 = vadd.f32 %v732_v38, %v717_v48  ;;  %v651_v38 = vmul.f32 %v1375_v37, %v1443_v55 }
 0x14a   :  { %v766_v16 = vadd.f32 %v762_v24, %v738_v51 }
 0x14e   :  { %v1794_v47 = vpop.permute.xlu2 %867 }
 0x14f   :  { %v760_v28 = vpop.permute.xlu1 %759 }
 0x150   :  { %v748_v50 = vpop.permute.xlu0 %747  ;;  %v765_v24 = vadd.f32 %v760_v28, %v737_v32  ;;  %v652_v28 = vmul.f32 %v1381_v43, %v1443_v55 }
 0x152   :  { %v670_v60 = vadd.f32 %v1766_v30, %v652_v28 }
 0x156   :  { %v1800_v59 = vpop.permute.xlu2 %883 }
 0x157   :  { %v802_v56 = vpop.permute.xlu1 %801 }
 0x158   :  { %v806_v36 = vadd.f32 %v802_v56, %v786_v53  ;;  %v800_v9 = vpop.permute.xlu0 %799  ;;  %v752_v56 = vadd.f32 %v748_v50, %v724_v19  ;;  %v655_v50 = vmul.f32 %v1375_v37, %v1582_v27 }
 0x159   :  { %v805_v33 = vadd.f32 %v800_v9, %v785_v17 }
 0x15a   :  { %v834_v21 = vadd.f32 %v830_v52, %v806_v36  ;;  %v683_v48 = vadd.f32 %v1790_v61, %v655_v50 }
 0x15c   :  { %v920_v0 = vrot.slane %v834_v21, 1  ;;  %v669_v21 = vadd.f32 %v664_v54, %v651_v38  ;;  %v851_v54 = vmul.f32 %v1519_v13, %v1637_v62  ;;  %v711_v37 = vadd.f32 %v1792_v1, %v683_v48  ;;  %v1069_v1 = vld [vmem:[%s1890_s3 + $0x28] sm:$0x3f] }
 0x15e   :  { %v1806_v20 = vpop.permute.xlu2 %909  ;;  %v1808_v40 = vadd.f32 %v920_v0, %v766_v16  ;;  %v698_v16 = vadd.f32 %v694_v44, %v670_v60  ;;  %v697_v55 = vadd.f32 %v1775_v11, %v669_v21 }
 0x15f   :  { %v828_v58 = vpop.permute.xlu1 %827 }
 0x160   :  { %v833_v10 = vadd.f32 %v828_v58, %v805_v33  ;;  %v816_v31 = vpop.permute.xlu0 %815  ;;  %v656_v33 = vmul.f32 %v1381_v43, %v1582_v27  ;;  %v853_v44 = vadd.f32 %v851_v54, %v697_v55  ;;  %v721_v43 = vmul.f32 %v1519_v13, %v1591_v57 }
 0x161   :  { %v820_v23 = vadd.f32 %v816_v31, %v792_v12 }
 0x162   :  { %v919_v49 = vrot.slane %v833_v10, 1  ;;  %v684_v58 = vadd.f32 %v1788_v8, %v656_v33  ;;  %v857_v10 = vmul.f32 %v1519_v13, %v1633_v18  ;;  %v873_v11 = vadd.f32 %v1794_v47, %v853_v44  ;;  %v1068_v47 = vld [vmem:[%s1890_s3 + $0x20] sm:$0xff] }
 0x163   :  { %v858_v8 = vmul.f32 %v1527_v34, %v1633_v18  ;;  %v723_v57 = vadd.f32 %v721_v43, %v1771_v35  ;;  %v942_v46 = vmul.f32 %v1068_v47, %v1683_v45 }
 0x164   :  { %v921_v52 = vsel %vm450_vm0, %v919_v49, %v920_v0  ;;  %v852_v0 = vmul.f32 %v1527_v34, %v1637_v62  ;;  %v712_v61 = vadd.f32 %v1781_v5, %v684_v58  ;;  %v859_v39 = vadd.f32 %v857_v10, %v711_v37 }
 0x165   :  { %v924_v26 = vadd.f32 %v921_v52, %v765_v24  ;;  %v943_v5 = vmul.f32 %v1069_v1, %v1683_v45  ;;  %v751_v52 = vadd.f32 %v1786_v4, %v723_v57 }
 0x166   :  { %v776_v2 = vpop.permute.xlu2 %775  ;;  %v854_v30 = vadd.f32 %v852_v0, %v698_v16  ;;  %v860_v34 = vadd.f32 %v858_v8, %v712_v61 }
 0x167   :  { %v844_v53 = vpop.permute.xlu1 %843  ;;  %v780_v63 = vadd.f32 %v776_v2, %v752_v56 }
 0x168   :  { %v848_v51 = vadd.f32 %v844_v53, %v820_v23  ;;  %v842_v15 = vpop.permute.xlu0 %841  ;;  %v888_v23 = vadd.f32 %v1800_v59, %v860_v34  ;;  %v1074_v59 = vld [vmem:[%s1890_s3 + $0x38] sm:$0x3f] }
 0x169   :  { %v847_v36 = vadd.f32 %v842_v15, %v819_v14  ;;  %v975_v38 = vmul.f32 %v1074_v59, %v1683_v45 }
 0x16a   :  { %v952_v7 = vrot.slane %v848_v51, 1 }
 0x16b   :  { %v951_v29 = vrot.slane %v847_v36, 1 }
 0x16c   :  { %v957_v9 = vadd.f32 %v952_v7, %v780_v63 }
 0x16d   :  { %v953_v6 = vsel %vm450_vm0, %v951_v29, %v952_v7 }
 0x16f   :  { %v882_v42 = vpop.permute.xlu1 %881 }
 0x170   :  { %v870_v17 = vpop.permute.xlu0 %869  ;;  %v887_v49 = vadd.f32 %v882_v42, %v859_v39 }
 0x171   :  { %v874_v22 = vadd.f32 %v870_v17, %v854_v30 }
 0x172   :  { %v915_v14 = vadd.f32 %v1806_v20, %v887_v49  ;;  %v1073_v20 = vld [vmem:[%s1890_s3 + $0x30] sm:$0xff] }
 0x173   :  { %v974_v63 = vmul.f32 %v1073_v20, %v1683_v45 }
 0x177   :  { %v898_v31 = vpop.permute.xlu1 %897 }
 0x178   :  { %v902_v27 = vadd.f32 %v898_v31, %v874_v22  ;;  %v896_v62 = vpop.permute.xlu0 %895 }
 0x179   :  { %v901_v32 = vadd.f32 %v896_v62, %v873_v11 }
 0x17a   :  { %v929_v3 = vrot.slane %v902_v27, 2 }
 0x17b   :  { %v928_v13 = vrot.slane %v901_v32, 2 }
 0x17c   :  { %v934_v24 = vadd.f32 %v929_v3, %v1808_v40 }
 0x17d   :  { %v930_v18 = vsel %vm460_vm2, %v928_v13, %v929_v3 }
 0x17e   :  { %v938_v12 = vadd.f32 %v934_v24, %v1723_v41  ;;  %v933_v19 = vadd.f32 %v930_v18, %v924_v26  ;;  %v960_v26 = vrot.slane %v915_v14, 2 }
 0x17f   :  { %v774_v2 = vpop.permute.xlu1 %773 }
 0x180   :  { %v945_v35 = vadd.f32 %v943_v5, %v938_v12  ;;  %v937_v53 = vadd.f32 %v933_v19, %v1723_v41  ;;  %v779_v56 = vadd.f32 %v774_v2, %v751_v52  ;;  %v912_v40 = vpop.permute.xlu0 %911 }
 0x181   :  { %v916_v51 = vadd.f32 %v912_v40, %v888_v23 }
 0x182   :  { %1071 = vst.msk [vmem:[%s1892_s5 + $0x28] sm:$0x3f] %vm481_vm1, %v945_v35  ;;  %v944_v4 = vadd.f32 %v942_v46, %v937_v53  ;;  %v956_v15 = vadd.f32 %v953_v6, %v779_v56 }
 0x183   :  { %v961_v41 = vrot.slane %v916_v51, 2 }
 0x184   :  { %1070 = vst.msk [vmem:[%s1892_s5 + $0x20] sm:$0xff] %vm479_vm3, %v944_v4 }
 0x185   :  { %v962_v36 = vsel %vm460_vm2, %v960_v26, %v961_v41  ;;  %v966_v28 = vadd.f32 %v961_v41, %v957_v9 }
 0x186   :  { %v965_v7 = vadd.f32 %v962_v36, %v956_v15 }
 0x187   :  { %v970_v29 = vadd.f32 %v966_v28, %v1691_v25 }
 0x188   :  { %v969_v21 = vadd.f32 %v965_v7, %v1691_v25 }
 0x189   :  { %v977_v6 = vadd.f32 %v975_v38, %v970_v29 }
 0x18a   :  { %v976_v60 = vadd.f32 %v974_v63, %v969_v21 }
 0x18b   :  { %1076 = vst.msk [vmem:[%s1892_s5 + $0x38] sm:$0x3f] %vm481_vm1, %v977_v6 }
 0x18c   :  { %1075 = vst.msk [vmem:[%s1892_s5 + $0x30] sm:$0xff] %vm479_vm3, %v976_v60 }
 0x18d   :  { %985 = vsyncpa [#allocation4], 1 }
 0x18e   :  { %986 = vsyncpa [#allocation6], 1 }

</bundles_post_ra>
